<compile_context>
chip_gen: v6e
topology: v6e:2x2x1
jax: 0.10.0
libtpu: 0.0.40
codegen_flags: <defaults>
</compile_context>

<pallas_src>
import numpy as np
import jax
import jax.numpy as jnp
from jax.experimental import pallas as pl
from jax.experimental.pallas import tpu as pltpu

# ---------------- configuration (small, consistent with the module) -------------
N_NODES = 16          # atoms per molecule batch
N_GRAPHS = 2          # molecules per batch
N_BATCHES = 8         # independent molecule batches -> grid axis
EDGE_DIM = 25         # fixed by MolAttentiveFP_EA.forward (edge_attr = ones(E, 25))
AFP_IN = 8            # afp_in_channels
AFP_HID = 32          # afp_hidden_channels
AFP_OUT = 8           # afp_out_channels
NUM_LAYERS = 2        # afp_num_layers   -> 1 extra GATConv atom layer
NUM_TIMESTEPS = 2     # afp_num_timesteps
NEG_SLOPE = 0.01      # leaky_relu slope used throughout PyG AttentiveFP
LANE = 128
# TODO(synk): dropout in AttentiveFP defaults to p=0.0 (identity), so it is omitted.


def _pad_to(n, m):
    return ((n + m - 1) // m) * m


class _SlabBuilder:
    """Packs many small 2-D arrays into one (rows, 128) slab; each block starts at a
    row multiple of `row_align` (8 for f32, 16 for bf16 -> one (16,128) tile) so
    in-kernel static slices stay tile-aligned."""

    def __init__(self, row_align):
        self.row_align = row_align
        self.items = []
        self.layout = {}
        self.rows = 0

    def add(self, name, arr):
        arr = np.asarray(arr, np.float32)
        r, c = arr.shape
        assert c <= LANE, (name, arr.shape)
        self.layout[name] = (self.rows, r, c)
        self.items.append((self.rows, arr))
        self.rows += _pad_to(r, self.row_align)

    def build(self):
        slab = np.zeros((_pad_to(self.rows, self.row_align), LANE), np.float32)
        for r0, arr in self.items:
            slab[r0:r0 + arr.shape[0], :arr.shape[1]] = arr
        return slab, dict(self.layout)


def _make_kernel(wlayout, blayout, slayout, num_layers, num_timesteps, n_edges):
    H = AFP_HID
    E = n_edges

    def kernel(x_ref, s_ref, w_ref, b_ref, out_ref):
        def W(name):                                   # bf16 matmul-operand slab
            r, nr, nc = wlayout[name]
            return w_ref[r:r + nr, 0:nc]

        def B(name):                                   # f32 bias / vector slab
            r, nr, nc = blayout[name]
            return b_ref[r:r + nr, 0:nc]

        def S(name):                                   # bf16 one-hot structure slab
            r, nr, nc = slayout[name]
            return s_ref[r:r + nr, 0:nc]

        def mm(a, w_bf16):
            # single-pass MXU matmul: bf16 operands, f32 accumulation
            return jnp.dot(a.astype(jnp.bfloat16), w_bf16,
                           preferred_element_type=jnp.float32)

        def mm_oh(onehot_bf16, dense):
            # gather / scatter-add as a bf16 MXU matmul (one-hot entries exact in bf16)
            return jnp.dot(onehot_bf16, dense.astype(jnp.bfloat16),
                           preferred_element_type=jnp.float32)

        def leaky(v):
            return jnp.where(v > 0, v, NEG_SLOPE * v)

        def elu(v):
            return jnp.where(v > 0, v, jnp.exp(jnp.minimum(v, 0.0)) - 1.0)

        def relu(v):
            return jnp.maximum(v, 0.0)

        def gru(prefix, inp, hid):
            # torch.nn.GRUCell, gate order r/z/n, fused 3-gate matmuls, f32 elementwise
            gi = mm(inp, W(prefix + "_wih")) + B(prefix + "_bih")   # (., 3H)
            gh = mm(hid, W(prefix + "_whh")) + B(prefix + "_bhh")   # (., 3H)
            r = jax.nn.sigmoid(gi[:, 0:H] + gh[:, 0:H])
            z = jax.nn.sigmoid(gi[:, H:2 * H] + gh[:, H:2 * H])
            n = jnp.tanh(gi[:, 2 * H:3 * H] + r * gh[:, 2 * H:3 * H])
            return (1.0 - z) * n + z * hid

        def softmax_num(alpha):
            # torch_geometric.utils.softmax numerator; the max-shift constant cancels
            # within each segment, so one global max is mathematically equivalent to
            # the per-segment max (weaker only for extreme score spreads).
            return jnp.exp(alpha - jnp.max(alpha))

        def seg_normalize(res, bias):
            # res = scatter of [msg*ex | ex]; the softmax denominator is constant
            # within a segment, so it folds into the scattered sums -> no gather-back
            # matmul.  +1e-16 matches PyG's softmax epsilon; exact division.
            return elu(res[:, 0:H] / (res[:, H:H + 1] + 1e-16) + bias)

        # graph structure (bf16 one-hots)
        ST = S("ST")          # (2E, N) fused [src ; dst] gather one-hot
        Tt = S("Tt")          # (N, E)  scatter-add edges -> target nodes
        G = S("G")            # (N, B)  node -> graph gather
        Gt = S("Gt")          # (B, N)  scatter-add nodes -> graphs

        # ---------------- atom embedding ----------------
        x = leaky(mm(x_ref[...], W("lin1_w")) + B("lin1_b"))        # (N, H)

        # GATEConv (edge-attributed gated attention) + GRU.
        # Fused node projection [lin2(x) | 0 | x@att_r | x@W1]; the bias adds a
        # constant 1 in the zero column (softmax-denominator carrier) and the edge
        # bias eb (= colsum of lin1's edge half, exact for all-ones edge_attr) to the
        # x@W1 block.  edge_attr == ones(E, 25) is thereby folded away entirely.
        xp = mm(x, W("gate_proj")) + B("gate_pb")                    # (N, 2H+2)
        gath = mm_oh(ST, xp)                                         # (2E, 2H+2)
        a_l = mm(leaky(gath[:E, H + 2:2 * H + 2]), W("gate_attl"))   # (E, 1)  att_l on lin1(x_j||e)
        alpha = leaky(a_l + gath[E:, H + 1:H + 2])                   # + x_i @ att_r
        ex = softmax_num(alpha)
        res = mm_oh(Tt, gath[:E, 0:H + 1] * ex)                      # (N, H+1) = [sum msg*ex | sum ex]
        h = seg_normalize(res, B("g_bias"))
        x = relu(gru("gru0", h, x))

        # GATConv atom layers (heads=1, no self loops) + GRUs.
        # Fused node projection [x@W | 0 | x@(W@att_src) | x@(W@att_dst)]
        # (attention columns pre-folded host-side via matmul associativity).
        for li in range(num_layers - 1):
            pre = "atom%d" % li
            xp = mm(x, W(pre + "_proj")) + B(pre + "_pb")            # (N, H+3)
            gath = mm_oh(ST, xp)                                     # (2E, H+3)
            alpha = leaky(gath[:E, H + 1:H + 2] + gath[E:, H + 2:H + 3])
            ex = softmax_num(alpha)
            res = mm_oh(Tt, gath[:E, 0:H + 1] * ex)                  # (N, H+1)
            h = seg_normalize(res, B(pre + "_bias"))
            x = relu(gru(pre + "_gru", h, x))

        # ---------------- molecule embedding ----------------
        # mol_conv is GATConv(hidden, hidden) with one shared lin; mol_w @ att_dst is
        # precomputed host-side so the timestep loop never recomputes out @ mol_w.
        out = relu(mm_oh(Gt, x))                                     # global_add_pool (B, H)
        xsp = mm(x, W("mol_proj")) + B("mol_pb")                     # (N, H+2) = [x@molW | 1 | a_src]
        mol_bias = B("mol_bias")
        w_adst = W("mol_wadst")
        for _ in range(num_timesteps):
            a_d = mm_oh(G, mm(out, w_adst))                          # (N, 1) gathered dst score
            alpha = leaky(xsp[:, H + 1:H + 2] + a_d)
            ex = softmax_num(alpha)
            res = mm_oh(Gt, xsp[:, 0:H + 1] * ex)                    # (B, H+1)
            h = seg_normalize(res, mol_bias)
            out = relu(gru("mol_gru", h, out))

        # ---------------- predictor ----------------
        out_ref[...] = mm(out, W("lin2_w")) + B("lin2_b")            # (B, out_channels)

    return kernel


def build_param_slabs(key):
    """AttentiveFP parameters packed into a bf16 matmul-weight slab and an f32
    bias/vector slab (elementwise math stays f32; v5e has no bf16 VPU/EUP)."""
    keys = iter(jax.random.split(key, 64))

    def w(*shape, scale=0.1):
        return np.asarray(scale * jax.random.normal(next(keys), shape, dtype=jnp.float32))

    H = AFP_HID
    wb = _SlabBuilder(row_align=16)    # bf16 slab: blocks aligned to one (16,128) tile
    bb = _SlabBuilder(row_align=8)     # f32 slab

    def add_gru(prefix):
        # fused torch.nn.GRUCell params: W_ih^T (in,3H), W_hh^T (H,3H), biases (1,3H)
        wb.add(prefix + "_wih", w(H, 3 * H))
        wb.add(prefix + "_whh", w(H, 3 * H))
        bb.add(prefix + "_bih", w(1, 3 * H))
        bb.add(prefix + "_bhh", w(1, 3 * H))

    wb.add("lin1_w", w(AFP_IN, H))
    bb.add("lin1_b", w(1, H))

    # GATEConv: lin1 node half W1, edge bias eb (= colsum of lin1's edge half, exact
    # because edge_attr is all ones), lin2 W2, attention vectors.
    g_w1x = w(H, H)
    g_eb = np.sum(w(EDGE_DIM, H), axis=0, keepdims=True)             # (1, H)
    g_w2 = w(H, H)
    att_l = w(H, 1)
    att_r = w(H, 1)
    wb.add("gate_proj", np.concatenate(                              # [W2 | 0 | att_r | W1]
        [g_w2, np.zeros((H, 1), np.float32), att_r, g_w1x], axis=1))
    gate_pb = np.zeros((1, 2 * H + 2), np.float32)                   # [0 | 1 | 0 | eb]
    gate_pb[0, H] = 1.0
    gate_pb[0, H + 2:] = g_eb[0]
    bb.add("gate_pb", gate_pb)
    wb.add("gate_attl", att_l)
    bb.add("g_bias", w(1, H))
    add_gru("gru0")

    for li in range(NUM_LAYERS - 1):
        pre = "atom%d" % li
        Wl = w(H, H)
        a_src = w(H, 1)
        a_dst = w(H, 1)
        wb.add(pre + "_proj", np.concatenate(                        # [W | 0 | W@a_src | W@a_dst]
            [Wl, np.zeros((H, 1), np.float32), Wl @ a_src, Wl @ a_dst], axis=1))
        pb = np.zeros((1, H + 3), np.float32)
        pb[0, H] = 1.0
        bb.add(pre + "_pb", pb)
        bb.add(pre + "_bias", w(1, H))
        add_gru(pre + "_gru")

    mol_w = w(H, H)
    m_src = w(H, 1)
    m_dst = w(H, 1)
    wb.add("mol_proj", np.concatenate(                               # [mol_w | 0 | mol_w@a_src]
        [mol_w, np.zeros((H, 1), np.float32), mol_w @ m_src], axis=1))
    pb = np.zeros((1, H + 2), np.float32)
    pb[0, H] = 1.0
    bb.add("mol_pb", pb)
    wb.add("mol_wadst", mol_w @ m_dst)                               # hoisted dst projection
    bb.add("mol_bias", w(1, H))
    add_gru("mol_gru")

    wb.add("lin2_w", w(H, AFP_OUT))
    bb.add("lin2_b", w(1, AFP_OUT))

    wslab, wlayout = wb.build()
    bslab, blayout = bb.build()
    return (jnp.asarray(wslab, jnp.bfloat16), wlayout,
            jnp.asarray(bslab, jnp.float32), blayout)


def build_struct_slab(edge_index, batch, num_nodes, num_graphs):
    """Graph one-hot structure (fused [S;T], T^T, G, G^T) packed into one slab
    (cast to bf16 at the call site; one-hot entries are exact in bf16)."""
    edge_index = np.asarray(edge_index)
    batch = np.asarray(batch)
    e = edge_index.shape[1]
    S = np.zeros((e, num_nodes), np.float32)
    S[np.arange(e), edge_index[0]] = 1.0
    T = np.zeros((e, num_nodes), np.float32)
    T[np.arange(e), edge_index[1]] = 1.0
    G = np.zeros((num_nodes, num_graphs), np.float32)
    G[np.arange(num_nodes), batch] = 1.0

    b = _SlabBuilder(row_align=16)                      # bf16 tile = 16 rows
    b.add("ST", np.concatenate([S, T], axis=0))         # (2E, N)
    b.add("Tt", T.T)                                    # (N, E)
    b.add("G", G)                                       # (N, B)
    b.add("Gt", G.T)                                    # (B, N)
    slab, layout = b.build()
    return slab, layout


def mol_attentive_fp_ea(x_batched, struct_batched, slayout, n_edges, num_graphs,
                        w_slab, wlayout, b_slab, blayout):
    """Batched dense-form AttentiveFP forward: one pallas_call, one grid step per
    independent molecule batch (parallel -> sharded across TCs on v7x); the two
    parameter slabs stay VMEM-resident across grid steps."""
    # TODO(synk): at realistic graph sizes the dense one-hot / fully-resident design
    # hits VMEM limits (earliest on v7x, 64 MiB); switch to index-based gathers via
    # PrefetchScalarGridSpec scalar prefetch + an edge-block grid there.
    nb, n, _ = x_batched.shape
    sr, sc = struct_batched.shape[1:]
    kernel = _make_kernel(wlayout, blayout, slayout, NUM_LAYERS, NUM_TIMESTEPS, n_edges)
    return pl.pallas_call(
        kernel,
        out_shape=jax.ShapeDtypeStruct((nb, num_graphs, AFP_OUT), jnp.float32),
        grid=(nb,),
        in_specs=[
            pl.BlockSpec((None, n, AFP_IN), lambda i: (i, 0, 0)),   # streams per batch
            pl.BlockSpec((None, sr, sc), lambda i: (i, 0, 0)),      # streams per batch
            pl.BlockSpec(w_slab.shape, lambda i: (0, 0)),           # VMEM-resident (bf16)
            pl.BlockSpec(b_slab.shape, lambda i: (0, 0)),           # VMEM-resident (f32)
        ],
        out_specs=pl.BlockSpec((None, num_graphs, AFP_OUT), lambda i: (i, 0, 0)),
        compiler_params=pltpu.CompilerParams(
            dimension_semantics=("parallel",)),
    )(x_batched, struct_batched, w_slab, b_slab)


if __name__ == "__main__":
    key = jax.random.PRNGKey(0)
    kx, kp = jax.random.split(key)

    x = jax.random.normal(kx, (N_BATCHES, N_NODES, AFP_IN), dtype=jnp.float32)

    # deterministic bidirectional ring edges within each molecule
    per = N_NODES // N_GRAPHS
    src, dst = [], []
    for g in range(N_GRAPHS):
        base = g * per
        for i in range(per):
            a, b2 = base + i, base + (i + 1) % per
            src += [a, b2]
            dst += [b2, a]
    edge_index = np.array([src, dst], dtype=np.int32)               # (2, E) with E = 32
    batch = np.repeat(np.arange(N_GRAPHS, dtype=np.int32), per)     # (N,)

    struct_np, slayout = build_struct_slab(edge_index, batch, N_NODES, N_GRAPHS)
    # same topology replicated per batch here; in general each batch streams its own
    struct_batched = jnp.asarray(
        np.broadcast_to(struct_np, (N_BATCHES,) + struct_np.shape), jnp.bfloat16)

    w_slab, wlayout, b_slab, blayout = build_param_slabs(kp)

    y = mol_attentive_fp_ea(x, struct_batched, slayout, edge_index.shape[1],
                            N_GRAPHS, w_slab, wlayout, b_slab, blayout)
    y = jax.block_until_ready(y)
    assert y.shape == (N_BATCHES, N_GRAPHS, AFP_OUT)
    assert bool(jnp.all(jnp.isfinite(y)))
    print("KERNEL_OK")
</pallas_src>

<mosaic_0001>
module attributes {stable_mosaic.version = 11 : i64} {
  func.func @kernel(%arg0: i32, %arg1: memref<1x16x8xf32, #tpu.memory_space<vmem>>, %arg2: memref<1x112x128xbf16, #tpu.memory_space<vmem>>, %arg3: memref<400x128xbf16, #tpu.memory_space<vmem>>, %arg4: memref<112x128xf32, #tpu.memory_space<vmem>>, %arg5: memref<1x2x8xf32, #tpu.memory_space<vmem>>) attributes {dimension_semantics = [#tpu.dimension_semantics<parallel>], iteration_bounds = array<i64: 8>, scalar_prefetch = 0 : i64, scratch_operands = 0 : i64, tpu.core_type = #tpu.core_type<tc>, window_params = [{transform_indices = @transform_0, window_bounds = array<i64: 1, 16, 8>}, {transform_indices = @transform_1, window_bounds = array<i64: 1, 112, 128>}, {pipeline_mode = #tpu.pipeline_mode<synchronous>, transform_indices = @transform_2, window_bounds = array<i64: 400, 128>}, {pipeline_mode = #tpu.pipeline_mode<synchronous>, transform_indices = @transform_3, window_bounds = array<i64: 112, 128>}, {transform_indices = @transform_4, window_bounds = array<i64: 1, 2, 8>}]} {
    %c0 = arith.constant 0 : index
    %c0_0 = arith.constant 0 : index
    %c0_1 = arith.constant 0 : index
    %0 = vector.load %arg2[%c0, %c0_0, %c0_1] : memref<1x112x128xbf16, #tpu.memory_space<vmem>>, vector<1x64x16xbf16>
    %1 = vector.shape_cast %0 : vector<1x64x16xbf16> to vector<64x16xbf16>
    %c0_2 = arith.constant 0 : index
    %c64 = arith.constant 64 : index
    %c0_3 = arith.constant 0 : index
    %2 = vector.load %arg2[%c0_2, %c64, %c0_3] : memref<1x112x128xbf16, #tpu.memory_space<vmem>>, vector<1x16x32xbf16>
    %3 = vector.shape_cast %2 : vector<1x16x32xbf16> to vector<16x32xbf16>
    %c0_4 = arith.constant 0 : index
    %c80 = arith.constant 80 : index
    %c0_5 = arith.constant 0 : index
    %4 = vector.load %arg2[%c0_4, %c80, %c0_5] : memref<1x112x128xbf16, #tpu.memory_space<vmem>>, vector<1x16x2xbf16>
    %5 = vector.shape_cast %4 : vector<1x16x2xbf16> to vector<16x2xbf16>
    %c0_6 = arith.constant 0 : index
    %c96 = arith.constant 96 : index
    %c0_7 = arith.constant 0 : index
    %6 = vector.load %arg2[%c0_6, %c96, %c0_7] : memref<1x112x128xbf16, #tpu.memory_space<vmem>>, vector<1x2x16xbf16>
    %7 = vector.shape_cast %6 : vector<1x2x16xbf16> to vector<2x16xbf16>
    %c0_8 = arith.constant 0 : index
    %c0_9 = arith.constant 0 : index
    %c0_10 = arith.constant 0 : index
    %8 = vector.load %arg1[%c0_8, %c0_9, %c0_10] : memref<1x16x8xf32, #tpu.memory_space<vmem>>, vector<1x16x8xf32>
    %9 = vector.shape_cast %8 : vector<1x16x8xf32> to vector<16x8xf32>
    %c0_11 = arith.constant 0 : index
    %c0_12 = arith.constant 0 : index
    %10 = vector.load %arg3[%c0_11, %c0_12] : memref<400x128xbf16, #tpu.memory_space<vmem>>, vector<8x32xbf16>
    %11 = arith.truncf %9 : vector<16x8xf32> to vector<16x8xbf16>
    %cst = arith.constant dense<0.000000e+00> : vector<16x32xf32>
    %12 = tpu.matmul %11, %10, %cst {dimension_numbers = #tpu.dot_dimension_numbers<[1], [0], [0], [1], [0, 0, 1, 1], [], []>} : vector<16x8xbf16>, vector<8x32xbf16>, vector<16x32xf32> -> vector<16x32xf32>
    %c0_13 = arith.constant 0 : index
    %c0_14 = arith.constant 0 : index
    %13 = vector.load %arg4[%c0_13, %c0_14] : memref<112x128xf32, #tpu.memory_space<vmem>>, vector<1x32xf32>
    %14 = vector.broadcast %13 : vector<1x32xf32> to vector<16x32xf32>
    %15 = arith.addf %12, %14 : vector<16x32xf32>
    %cst_15 = arith.constant 0.000000e+00 : f32
    %16 = vector.broadcast %cst_15 : f32 to vector<16x32xf32>
    %17 = arith.cmpf ogt, %15, %16 : vector<16x32xf32>
    %cst_16 = arith.constant 0.00999999977 : f32
    %18 = vector.broadcast %cst_16 : f32 to vector<16x32xf32>
    %19 = arith.mulf %18, %15 : vector<16x32xf32>
    %20 = arith.select %17, %15, %19 : vector<16x32xi1>, vector<16x32xf32>
    %c16 = arith.constant 16 : index
    %c0_17 = arith.constant 0 : index
    %21 = vector.load %arg3[%c16, %c0_17] : memref<400x128xbf16, #tpu.memory_space<vmem>>, vector<32x66xbf16>
    %22 = arith.truncf %20 : vector<16x32xf32> to vector<16x32xbf16>
    %cst_18 = arith.constant dense<0.000000e+00> : vector<16x66xf32>
    %23 = tpu.matmul %22, %21, %cst_18 {dimension_numbers = #tpu.dot_dimension_numbers<[1], [0], [0], [1], [0, 0, 1, 1], [], []>} : vector<16x32xbf16>, vector<32x66xbf16>, vector<16x66xf32> -> vector<16x66xf32>
    %c8 = arith.constant 8 : index
    %c0_19 = arith.constant 0 : index
    %24 = vector.load %arg4[%c8, %c0_19] : memref<112x128xf32, #tpu.memory_space<vmem>>, vector<1x66xf32>
    %25 = vector.broadcast %24 : vector<1x66xf32> to vector<16x66xf32>
    %26 = arith.addf %23, %25 : vector<16x66xf32>
    %27 = arith.truncf %26 : vector<16x66xf32> to vector<16x66xbf16>
    %cst_20 = arith.constant dense<0.000000e+00> : vector<64x66xf32>
    %28 = tpu.matmul %1, %27, %cst_20 {dimension_numbers = #tpu.dot_dimension_numbers<[1], [0], [0], [1], [0, 0, 1, 1], [], []>} : vector<64x16xbf16>, vector<16x66xbf16>, vector<64x66xf32> -> vector<64x66xf32>
    %29 = vector.extract_strided_slice %28 {offsets = [0, 34], sizes = [32, 32], strides = [1, 1]} : vector<64x66xf32> to vector<32x32xf32>
    %cst_21 = arith.constant 0.000000e+00 : f32
    %30 = vector.broadcast %cst_21 : f32 to vector<32x32xf32>
    %31 = arith.cmpf ogt, %29, %30 : vector<32x32xf32>
    %cst_22 = arith.constant 0.00999999977 : f32
    %32 = vector.broadcast %cst_22 : f32 to vector<32x32xf32>
    %33 = arith.mulf %32, %29 : vector<32x32xf32>
    %34 = arith.select %31, %29, %33 : vector<32x32xi1>, vector<32x32xf32>
    %c48 = arith.constant 48 : index
    %c0_23 = arith.constant 0 : index
    %35 = vector.load %arg3[%c48, %c0_23] : memref<400x128xbf16, #tpu.memory_space<vmem>>, vector<32x1xbf16>
    %36 = arith.truncf %34 : vector<32x32xf32> to vector<32x32xbf16>
    %cst_24 = arith.constant dense<0.000000e+00> : vector<32x1xf32>
    %37 = tpu.matmul %36, %35, %cst_24 {dimension_numbers = #tpu.dot_dimension_numbers<[1], [0], [0], [1], [0, 0, 1, 1], [], []>} : vector<32x32xbf16>, vector<32x1xbf16>, vector<32x1xf32> -> vector<32x1xf32>
    %38 = vector.extract_strided_slice %28 {offsets = [32, 33], sizes = [32, 1], strides = [1, 1]} : vector<64x66xf32> to vector<32x1xf32>
    %39 = arith.addf %37, %38 : vector<32x1xf32>
    %cst_25 = arith.constant 0.000000e+00 : f32
    %40 = vector.broadcast %cst_25 : f32 to vector<32x1xf32>
    %41 = arith.cmpf ogt, %39, %40 : vector<32x1xf32>
    %cst_26 = arith.constant 0.00999999977 : f32
    %42 = vector.broadcast %cst_26 : f32 to vector<32x1xf32>
    %43 = arith.mulf %42, %39 : vector<32x1xf32>
    %44 = arith.select %41, %39, %43 : vector<32x1xi1>, vector<32x1xf32>
    %45 = vector.shape_cast %44 : vector<32x1xf32> to vector<1x32x1xf32>
    %cst_27 = arith.constant dense<0xFF800000> : vector<1xf32>
    %46 = vector.multi_reduction <maximumf>, %45, %cst_27 [1, 2] : vector<1x32x1xf32> to vector<1xf32>
    %47 = vector.shape_cast %46 : vector<1xf32> to vector<1x1x1xf32>
    %48 = vector.extract %47[0, 0, 0] : f32 from vector<1x1x1xf32>
    %49 = vector.broadcast %48 : f32 to vector<32x1xf32>
    %50 = arith.subf %44, %49 : vector<32x1xf32>
    %51 = math.exp %50 : vector<32x1xf32>
    %52 = vector.extract_strided_slice %28 {offsets = [0, 0], sizes = [32, 33], strides = [1, 1]} : vector<64x66xf32> to vector<32x33xf32>
    %53 = vector.broadcast %51 : vector<32x1xf32> to vector<32x33xf32>
    %54 = arith.mulf %52, %53 : vector<32x33xf32>
    %55 = arith.truncf %54 : vector<32x33xf32> to vector<32x33xbf16>
    %cst_28 = arith.constant dense<0.000000e+00> : vector<16x33xf32>
    %56 = tpu.matmul %3, %55, %cst_28 {dimension_numbers = #tpu.dot_dimension_numbers<[1], [0], [0], [1], [0, 0, 1, 1], [], []>} : vector<16x32xbf16>, vector<32x33xbf16>, vector<16x33xf32> -> vector<16x33xf32>
    %c16_29 = arith.constant 16 : index
    %c0_30 = arith.constant 0 : index
    %57 = vector.load %arg4[%c16_29, %c0_30] : memref<112x128xf32, #tpu.memory_space<vmem>>, vector<1x32xf32>
    %58 = vector.extract_strided_slice %56 {offsets = [0, 0], sizes = [16, 32], strides = [1, 1]} : vector<16x33xf32> to vector<16x32xf32>
    %59 = vector.extract_strided_slice %56 {offsets = [0, 32], sizes = [16, 1], strides = [1, 1]} : vector<16x33xf32> to vector<16x1xf32>
    %cst_31 = arith.constant 1.000000e-16 : f32
    %60 = vector.broadcast %cst_31 : f32 to vector<16x1xf32>
    %61 = arith.addf %59, %60 : vector<16x1xf32>
    %62 = vector.broadcast %61 : vector<16x1xf32> to vector<16x32xf32>
    %63 = arith.divf %58, %62 : vector<16x32xf32>
    %64 = vector.broadcast %57 : vector<1x32xf32> to vector<16x32xf32>
    %65 = arith.addf %63, %64 : vector<16x32xf32>
    %cst_32 = arith.constant 0.000000e+00 : f32
    %66 = vector.broadcast %cst_32 : f32 to vector<16x32xf32>
    %67 = arith.cmpf ogt, %65, %66 : vector<16x32xf32>
    %cst_33 = arith.constant 0.000000e+00 : f32
    %68 = vector.broadcast %cst_33 : f32 to vector<16x32xf32>
    %69 = arith.minimumf %65, %68 : vector<16x32xf32>
    %70 = math.exp %69 : vector<16x32xf32>
    %cst_34 = arith.constant 1.000000e+00 : f32
    %71 = vector.broadcast %cst_34 : f32 to vector<16x32xf32>
    %72 = arith.subf %70, %71 : vector<16x32xf32>
    %73 = arith.select %67, %65, %72 : vector<16x32xi1>, vector<16x32xf32>
    %c80_35 = arith.constant 80 : index
    %c0_36 = arith.constant 0 : index
    %74 = vector.load %arg3[%c80_35, %c0_36] : memref<400x128xbf16, #tpu.memory_space<vmem>>, vector<32x96xbf16>
    %75 = arith.truncf %73 : vector<16x32xf32> to vector<16x32xbf16>
    %cst_37 = arith.constant dense<0.000000e+00> : vector<16x96xf32>
    %76 = tpu.matmul %75, %74, %cst_37 {dimension_numbers = #tpu.dot_dimension_numbers<[1], [0], [0], [1], [0, 0, 1, 1], [], []>} : vector<16x32xbf16>, vector<32x96xbf16>, vector<16x96xf32> -> vector<16x96xf32>
    %c24 = arith.constant 24 : index
    %c0_38 = arith.constant 0 : index
    %77 = vector.load %arg4[%c24, %c0_38] : memref<112x128xf32, #tpu.memory_space<vmem>>, vector<1x96xf32>
    %78 = vector.broadcast %77 : vector<1x96xf32> to vector<16x96xf32>
    %79 = arith.addf %76, %78 : vector<16x96xf32>
    %c112 = arith.constant 112 : index
    %c0_39 = arith.constant 0 : index
    %80 = vector.load %arg3[%c112, %c0_39] : memref<400x128xbf16, #tpu.memory_space<vmem>>, vector<32x96xbf16>
    %81 = arith.truncf %20 : vector<16x32xf32> to vector<16x32xbf16>
    %cst_40 = arith.constant dense<0.000000e+00> : vector<16x96xf32>
    %82 = tpu.matmul %81, %80, %cst_40 {dimension_numbers = #tpu.dot_dimension_numbers<[1], [0], [0], [1], [0, 0, 1, 1], [], []>} : vector<16x32xbf16>, vector<32x96xbf16>, vector<16x96xf32> -> vector<16x96xf32>
    %c32 = arith.constant 32 : index
    %c0_41 = arith.constant 0 : index
    %83 = vector.load %arg4[%c32, %c0_41] : memref<112x128xf32, #tpu.memory_space<vmem>>, vector<1x96xf32>
    %84 = vector.broadcast %83 : vector<1x96xf32> to vector<16x96xf32>
    %85 = arith.addf %82, %84 : vector<16x96xf32>
    %86 = vector.extract_strided_slice %79 {offsets = [0, 0], sizes = [16, 32], strides = [1, 1]} : vector<16x96xf32> to vector<16x32xf32>
    %87 = vector.extract_strided_slice %85 {offsets = [0, 0], sizes = [16, 32], strides = [1, 1]} : vector<16x96xf32> to vector<16x32xf32>
    %88 = arith.addf %86, %87 : vector<16x32xf32>
    %89 = arith.negf %88 : vector<16x32xf32>
    %90 = math.exp %89 : vector<16x32xf32>
    %cst_42 = arith.constant 1.000000e+00 : f32
    %91 = vector.broadcast %cst_42 : f32 to vector<16x32xf32>
    %92 = arith.addf %91, %90 : vector<16x32xf32>
    %93 = arith.divf %91, %92 : vector<16x32xf32>
    %94 = vector.extract_strided_slice %79 {offsets = [0, 32], sizes = [16, 32], strides = [1, 1]} : vector<16x96xf32> to vector<16x32xf32>
    %95 = vector.extract_strided_slice %85 {offsets = [0, 32], sizes = [16, 32], strides = [1, 1]} : vector<16x96xf32> to vector<16x32xf32>
    %96 = arith.addf %94, %95 : vector<16x32xf32>
    %97 = arith.negf %96 : vector<16x32xf32>
    %98 = math.exp %97 : vector<16x32xf32>
    %cst_43 = arith.constant 1.000000e+00 : f32
    %99 = vector.broadcast %cst_43 : f32 to vector<16x32xf32>
    %100 = arith.addf %99, %98 : vector<16x32xf32>
    %101 = arith.divf %99, %100 : vector<16x32xf32>
    %102 = vector.extract_strided_slice %79 {offsets = [0, 64], sizes = [16, 32], strides = [1, 1]} : vector<16x96xf32> to vector<16x32xf32>
    %103 = vector.extract_strided_slice %85 {offsets = [0, 64], sizes = [16, 32], strides = [1, 1]} : vector<16x96xf32> to vector<16x32xf32>
    %104 = arith.mulf %93, %103 : vector<16x32xf32>
    %105 = arith.addf %102, %104 : vector<16x32xf32>
    %106 = math.tanh %105 : vector<16x32xf32>
    %cst_44 = arith.constant 1.000000e+00 : f32
    %107 = vector.broadcast %cst_44 : f32 to vector<16x32xf32>
    %108 = arith.subf %107, %101 : vector<16x32xf32>
    %109 = arith.mulf %108, %106 : vector<16x32xf32>
    %110 = arith.mulf %101, %20 : vector<16x32xf32>
    %111 = arith.addf %109, %110 : vector<16x32xf32>
    %cst_45 = arith.constant 0.000000e+00 : f32
    %112 = vector.broadcast %cst_45 : f32 to vector<16x32xf32>
    %113 = arith.maximumf %111, %112 : vector<16x32xf32>
    %c144 = arith.constant 144 : index
    %c0_46 = arith.constant 0 : index
    %114 = vector.load %arg3[%c144, %c0_46] : memref<400x128xbf16, #tpu.memory_space<vmem>>, vector<32x35xbf16>
    %115 = arith.truncf %113 : vector<16x32xf32> to vector<16x32xbf16>
    %cst_47 = arith.constant dense<0.000000e+00> : vector<16x35xf32>
    %116 = tpu.matmul %115, %114, %cst_47 {dimension_numbers = #tpu.dot_dimension_numbers<[1], [0], [0], [1], [0, 0, 1, 1], [], []>} : vector<16x32xbf16>, vector<32x35xbf16>, vector<16x35xf32> -> vector<16x35xf32>
    %c40 = arith.constant 40 : index
    %c0_48 = arith.constant 0 : index
    %117 = vector.load %arg4[%c40, %c0_48] : memref<112x128xf32, #tpu.memory_space<vmem>>, vector<1x35xf32>
    %118 = vector.broadcast %117 : vector<1x35xf32> to vector<16x35xf32>
    %119 = arith.addf %116, %118 : vector<16x35xf32>
    %120 = arith.truncf %119 : vector<16x35xf32> to vector<16x35xbf16>
    %cst_49 = arith.constant dense<0.000000e+00> : vector<64x35xf32>
    %121 = tpu.matmul %1, %120, %cst_49 {dimension_numbers = #tpu.dot_dimension_numbers<[1], [0], [0], [1], [0, 0, 1, 1], [], []>} : vector<64x16xbf16>, vector<16x35xbf16>, vector<64x35xf32> -> vector<64x35xf32>
    %122 = vector.extract_strided_slice %121 {offsets = [0, 33], sizes = [32, 1], strides = [1, 1]} : vector<64x35xf32> to vector<32x1xf32>
    %123 = vector.extract_strided_slice %121 {offsets = [32, 34], sizes = [32, 1], strides = [1, 1]} : vector<64x35xf32> to vector<32x1xf32>
    %124 = arith.addf %122, %123 : vector<32x1xf32>
    %cst_50 = arith.constant 0.000000e+00 : f32
    %125 = vector.broadcast %cst_50 : f32 to vector<32x1xf32>
    %126 = arith.cmpf ogt, %124, %125 : vector<32x1xf32>
    %cst_51 = arith.constant 0.00999999977 : f32
    %127 = vector.broadcast %cst_51 : f32 to vector<32x1xf32>
    %128 = arith.mulf %127, %124 : vector<32x1xf32>
    %129 = arith.select %126, %124, %128 : vector<32x1xi1>, vector<32x1xf32>
    %130 = vector.shape_cast %129 : vector<32x1xf32> to vector<1x32x1xf32>
    %cst_52 = arith.constant dense<0xFF800000> : vector<1xf32>
    %131 = vector.multi_reduction <maximumf>, %130, %cst_52 [1, 2] : vector<1x32x1xf32> to vector<1xf32>
    %132 = vector.shape_cast %131 : vector<1xf32> to vector<1x1x1xf32>
    %133 = vector.extract %132[0, 0, 0] : f32 from vector<1x1x1xf32>
    %134 = vector.broadcast %133 : f32 to vector<32x1xf32>
    %135 = arith.subf %129, %134 : vector<32x1xf32>
    %136 = math.exp %135 : vector<32x1xf32>
    %137 = vector.extract_strided_slice %121 {offsets = [0, 0], sizes = [32, 33], strides = [1, 1]} : vector<64x35xf32> to vector<32x33xf32>
    %138 = vector.broadcast %136 : vector<32x1xf32> to vector<32x33xf32>
    %139 = arith.mulf %137, %138 : vector<32x33xf32>
    %140 = arith.truncf %139 : vector<32x33xf32> to vector<32x33xbf16>
    %cst_53 = arith.constant dense<0.000000e+00> : vector<16x33xf32>
    %141 = tpu.matmul %3, %140, %cst_53 {dimension_numbers = #tpu.dot_dimension_numbers<[1], [0], [0], [1], [0, 0, 1, 1], [], []>} : vector<16x32xbf16>, vector<32x33xbf16>, vector<16x33xf32> -> vector<16x33xf32>
    %c48_54 = arith.constant 48 : index
    %c0_55 = arith.constant 0 : index
    %142 = vector.load %arg4[%c48_54, %c0_55] : memref<112x128xf32, #tpu.memory_space<vmem>>, vector<1x32xf32>
    %143 = vector.extract_strided_slice %141 {offsets = [0, 0], sizes = [16, 32], strides = [1, 1]} : vector<16x33xf32> to vector<16x32xf32>
    %144 = vector.extract_strided_slice %141 {offsets = [0, 32], sizes = [16, 1], strides = [1, 1]} : vector<16x33xf32> to vector<16x1xf32>
    %cst_56 = arith.constant 1.000000e-16 : f32
    %145 = vector.broadcast %cst_56 : f32 to vector<16x1xf32>
    %146 = arith.addf %144, %145 : vector<16x1xf32>
    %147 = vector.broadcast %146 : vector<16x1xf32> to vector<16x32xf32>
    %148 = arith.divf %143, %147 : vector<16x32xf32>
    %149 = vector.broadcast %142 : vector<1x32xf32> to vector<16x32xf32>
    %150 = arith.addf %148, %149 : vector<16x32xf32>
    %cst_57 = arith.constant 0.000000e+00 : f32
    %151 = vector.broadcast %cst_57 : f32 to vector<16x32xf32>
    %152 = arith.cmpf ogt, %150, %151 : vector<16x32xf32>
    %cst_58 = arith.constant 0.000000e+00 : f32
    %153 = vector.broadcast %cst_58 : f32 to vector<16x32xf32>
    %154 = arith.minimumf %150, %153 : vector<16x32xf32>
    %155 = math.exp %154 : vector<16x32xf32>
    %cst_59 = arith.constant 1.000000e+00 : f32
    %156 = vector.broadcast %cst_59 : f32 to vector<16x32xf32>
    %157 = arith.subf %155, %156 : vector<16x32xf32>
    %158 = arith.select %152, %150, %157 : vector<16x32xi1>, vector<16x32xf32>
    %c176 = arith.constant 176 : index
    %c0_60 = arith.constant 0 : index
    %159 = vector.load %arg3[%c176, %c0_60] : memref<400x128xbf16, #tpu.memory_space<vmem>>, vector<32x96xbf16>
    %160 = arith.truncf %158 : vector<16x32xf32> to vector<16x32xbf16>
    %cst_61 = arith.constant dense<0.000000e+00> : vector<16x96xf32>
    %161 = tpu.matmul %160, %159, %cst_61 {dimension_numbers = #tpu.dot_dimension_numbers<[1], [0], [0], [1], [0, 0, 1, 1], [], []>} : vector<16x32xbf16>, vector<32x96xbf16>, vector<16x96xf32> -> vector<16x96xf32>
    %c56 = arith.constant 56 : index
    %c0_62 = arith.constant 0 : index
    %162 = vector.load %arg4[%c56, %c0_62] : memref<112x128xf32, #tpu.memory_space<vmem>>, vector<1x96xf32>
    %163 = vector.broadcast %162 : vector<1x96xf32> to vector<16x96xf32>
    %164 = arith.addf %161, %163 : vector<16x96xf32>
    %c208 = arith.constant 208 : index
    %c0_63 = arith.constant 0 : index
    %165 = vector.load %arg3[%c208, %c0_63] : memref<400x128xbf16, #tpu.memory_space<vmem>>, vector<32x96xbf16>
    %166 = arith.truncf %113 : vector<16x32xf32> to vector<16x32xbf16>
    %cst_64 = arith.constant dense<0.000000e+00> : vector<16x96xf32>
    %167 = tpu.matmul %166, %165, %cst_64 {dimension_numbers = #tpu.dot_dimension_numbers<[1], [0], [0], [1], [0, 0, 1, 1], [], []>} : vector<16x32xbf16>, vector<32x96xbf16>, vector<16x96xf32> -> vector<16x96xf32>
    %c64_65 = arith.constant 64 : index
    %c0_66 = arith.constant 0 : index
    %168 = vector.load %arg4[%c64_65, %c0_66] : memref<112x128xf32, #tpu.memory_space<vmem>>, vector<1x96xf32>
    %169 = vector.broadcast %168 : vector<1x96xf32> to vector<16x96xf32>
    %170 = arith.addf %167, %169 : vector<16x96xf32>
    %171 = vector.extract_strided_slice %164 {offsets = [0, 0], sizes = [16, 32], strides = [1, 1]} : vector<16x96xf32> to vector<16x32xf32>
    %172 = vector.extract_strided_slice %170 {offsets = [0, 0], sizes = [16, 32], strides = [1, 1]} : vector<16x96xf32> to vector<16x32xf32>
    %173 = arith.addf %171, %172 : vector<16x32xf32>
    %174 = arith.negf %173 : vector<16x32xf32>
    %175 = math.exp %174 : vector<16x32xf32>
    %cst_67 = arith.constant 1.000000e+00 : f32
    %176 = vector.broadcast %cst_67 : f32 to vector<16x32xf32>
    %177 = arith.addf %176, %175 : vector<16x32xf32>
    %178 = arith.divf %176, %177 : vector<16x32xf32>
    %179 = vector.extract_strided_slice %164 {offsets = [0, 32], sizes = [16, 32], strides = [1, 1]} : vector<16x96xf32> to vector<16x32xf32>
    %180 = vector.extract_strided_slice %170 {offsets = [0, 32], sizes = [16, 32], strides = [1, 1]} : vector<16x96xf32> to vector<16x32xf32>
    %181 = arith.addf %179, %180 : vector<16x32xf32>
    %182 = arith.negf %181 : vector<16x32xf32>
    %183 = math.exp %182 : vector<16x32xf32>
    %cst_68 = arith.constant 1.000000e+00 : f32
    %184 = vector.broadcast %cst_68 : f32 to vector<16x32xf32>
    %185 = arith.addf %184, %183 : vector<16x32xf32>
    %186 = arith.divf %184, %185 : vector<16x32xf32>
    %187 = vector.extract_strided_slice %164 {offsets = [0, 64], sizes = [16, 32], strides = [1, 1]} : vector<16x96xf32> to vector<16x32xf32>
    %188 = vector.extract_strided_slice %170 {offsets = [0, 64], sizes = [16, 32], strides = [1, 1]} : vector<16x96xf32> to vector<16x32xf32>
    %189 = arith.mulf %178, %188 : vector<16x32xf32>
    %190 = arith.addf %187, %189 : vector<16x32xf32>
    %191 = math.tanh %190 : vector<16x32xf32>
    %cst_69 = arith.constant 1.000000e+00 : f32
    %192 = vector.broadcast %cst_69 : f32 to vector<16x32xf32>
    %193 = arith.subf %192, %186 : vector<16x32xf32>
    %194 = arith.mulf %193, %191 : vector<16x32xf32>
    %195 = arith.mulf %186, %113 : vector<16x32xf32>
    %196 = arith.addf %194, %195 : vector<16x32xf32>
    %cst_70 = arith.constant 0.000000e+00 : f32
    %197 = vector.broadcast %cst_70 : f32 to vector<16x32xf32>
    %198 = arith.maximumf %196, %197 : vector<16x32xf32>
    %199 = arith.truncf %198 : vector<16x32xf32> to vector<16x32xbf16>
    %cst_71 = arith.constant dense<0.000000e+00> : vector<2x32xf32>
    %200 = tpu.matmul %7, %199, %cst_71 {dimension_numbers = #tpu.dot_dimension_numbers<[1], [0], [0], [1], [0, 0, 1, 1], [], []>} : vector<2x16xbf16>, vector<16x32xbf16>, vector<2x32xf32> -> vector<2x32xf32>
    %cst_72 = arith.constant 0.000000e+00 : f32
    %201 = vector.broadcast %cst_72 : f32 to vector<2x32xf32>
    %202 = arith.maximumf %200, %201 : vector<2x32xf32>
    %c240 = arith.constant 240 : index
    %c0_73 = arith.constant 0 : index
    %203 = vector.load %arg3[%c240, %c0_73] : memref<400x128xbf16, #tpu.memory_space<vmem>>, vector<32x34xbf16>
    %204 = arith.truncf %198 : vector<16x32xf32> to vector<16x32xbf16>
    %cst_74 = arith.constant dense<0.000000e+00> : vector<16x34xf32>
    %205 = tpu.matmul %204, %203, %cst_74 {dimension_numbers = #tpu.dot_dimension_numbers<[1], [0], [0], [1], [0, 0, 1, 1], [], []>} : vector<16x32xbf16>, vector<32x34xbf16>, vector<16x34xf32> -> vector<16x34xf32>
    %c72 = arith.constant 72 : index
    %c0_75 = arith.constant 0 : index
    %206 = vector.load %arg4[%c72, %c0_75] : memref<112x128xf32, #tpu.memory_space<vmem>>, vector<1x34xf32>
    %207 = vector.broadcast %206 : vector<1x34xf32> to vector<16x34xf32>
    %208 = arith.addf %205, %207 : vector<16x34xf32>
    %c80_76 = arith.constant 80 : index
    %c0_77 = arith.constant 0 : index
    %209 = vector.load %arg4[%c80_76, %c0_77] : memref<112x128xf32, #tpu.memory_space<vmem>>, vector<1x32xf32>
    %c272 = arith.constant 272 : index
    %c0_78 = arith.constant 0 : index
    %210 = vector.load %arg3[%c272, %c0_78] : memref<400x128xbf16, #tpu.memory_space<vmem>>, vector<32x1xbf16>
    %211 = arith.truncf %202 : vector<2x32xf32> to vector<2x32xbf16>
    %cst_79 = arith.constant dense<0.000000e+00> : vector<2x1xf32>
    %212 = tpu.matmul %211, %210, %cst_79 {dimension_numbers = #tpu.dot_dimension_numbers<[1], [0], [0], [1], [0, 0, 1, 1], [], []>} : vector<2x32xbf16>, vector<32x1xbf16>, vector<2x1xf32> -> vector<2x1xf32>
    %213 = arith.truncf %212 : vector<2x1xf32> to vector<2x1xbf16>
    %cst_80 = arith.constant dense<0.000000e+00> : vector<16x1xf32>
    %214 = tpu.matmul %5, %213, %cst_80 {dimension_numbers = #tpu.dot_dimension_numbers<[1], [0], [0], [1], [0, 0, 1, 1], [], []>} : vector<16x2xbf16>, vector<2x1xbf16>, vector<16x1xf32> -> vector<16x1xf32>
    %215 = vector.extract_strided_slice %208 {offsets = [0, 33], sizes = [16, 1], strides = [1, 1]} : vector<16x34xf32> to vector<16x1xf32>
    %216 = arith.addf %215, %214 : vector<16x1xf32>
    %cst_81 = arith.constant 0.000000e+00 : f32
    %217 = vector.broadcast %cst_81 : f32 to vector<16x1xf32>
    %218 = arith.cmpf ogt, %216, %217 : vector<16x1xf32>
    %cst_82 = arith.constant 0.00999999977 : f32
    %219 = vector.broadcast %cst_82 : f32 to vector<16x1xf32>
    %220 = arith.mulf %219, %216 : vector<16x1xf32>
    %221 = arith.select %218, %216, %220 : vector<16x1xi1>, vector<16x1xf32>
    %222 = vector.shape_cast %221 : vector<16x1xf32> to vector<1x16x1xf32>
    %cst_83 = arith.constant dense<0xFF800000> : vector<1xf32>
    %223 = vector.multi_reduction <maximumf>, %222, %cst_83 [1, 2] : vector<1x16x1xf32> to vector<1xf32>
    %224 = vector.shape_cast %223 : vector<1xf32> to vector<1x1x1xf32>
    %225 = vector.extract %224[0, 0, 0] : f32 from vector<1x1x1xf32>
    %226 = vector.broadcast %225 : f32 to vector<16x1xf32>
    %227 = arith.subf %221, %226 : vector<16x1xf32>
    %228 = math.exp %227 : vector<16x1xf32>
    %229 = vector.extract_strided_slice %208 {offsets = [0, 0], sizes = [16, 33], strides = [1, 1]} : vector<16x34xf32> to vector<16x33xf32>
    %230 = vector.broadcast %228 : vector<16x1xf32> to vector<16x33xf32>
    %231 = arith.mulf %229, %230 : vector<16x33xf32>
    %232 = arith.truncf %231 : vector<16x33xf32> to vector<16x33xbf16>
    %cst_84 = arith.constant dense<0.000000e+00> : vector<2x33xf32>
    %233 = tpu.matmul %7, %232, %cst_84 {dimension_numbers = #tpu.dot_dimension_numbers<[1], [0], [0], [1], [0, 0, 1, 1], [], []>} : vector<2x16xbf16>, vector<16x33xbf16>, vector<2x33xf32> -> vector<2x33xf32>
    %234 = vector.extract_strided_slice %233 {offsets = [0, 0], sizes = [2, 32], strides = [1, 1]} : vector<2x33xf32> to vector<2x32xf32>
    %235 = vector.extract_strided_slice %233 {offsets = [0, 32], sizes = [2, 1], strides = [1, 1]} : vector<2x33xf32> to vector<2x1xf32>
    %cst_85 = arith.constant 1.000000e-16 : f32
    %236 = vector.broadcast %cst_85 : f32 to vector<2x1xf32>
    %237 = arith.addf %235, %236 : vector<2x1xf32>
    %238 = vector.broadcast %237 : vector<2x1xf32> to vector<2x32xf32>
    %239 = arith.divf %234, %238 : vector<2x32xf32>
    %240 = vector.broadcast %209 : vector<1x32xf32> to vector<2x32xf32>
    %241 = arith.addf %239, %240 : vector<2x32xf32>
    %cst_86 = arith.constant 0.000000e+00 : f32
    %242 = vector.broadcast %cst_86 : f32 to vector<2x32xf32>
    %243 = arith.cmpf ogt, %241, %242 : vector<2x32xf32>
    %cst_87 = arith.constant 0.000000e+00 : f32
    %244 = vector.broadcast %cst_87 : f32 to vector<2x32xf32>
    %245 = arith.minimumf %241, %244 : vector<2x32xf32>
    %246 = math.exp %245 : vector<2x32xf32>
    %cst_88 = arith.constant 1.000000e+00 : f32
    %247 = vector.broadcast %cst_88 : f32 to vector<2x32xf32>
    %248 = arith.subf %246, %247 : vector<2x32xf32>
    %249 = arith.select %243, %241, %248 : vector<2x32xi1>, vector<2x32xf32>
    %c304 = arith.constant 304 : index
    %c0_89 = arith.constant 0 : index
    %250 = vector.load %arg3[%c304, %c0_89] : memref<400x128xbf16, #tpu.memory_space<vmem>>, vector<32x96xbf16>
    %251 = arith.truncf %249 : vector<2x32xf32> to vector<2x32xbf16>
    %cst_90 = arith.constant dense<0.000000e+00> : vector<2x96xf32>
    %252 = tpu.matmul %251, %250, %cst_90 {dimension_numbers = #tpu.dot_dimension_numbers<[1], [0], [0], [1], [0, 0, 1, 1], [], []>} : vector<2x32xbf16>, vector<32x96xbf16>, vector<2x96xf32> -> vector<2x96xf32>
    %c88 = arith.constant 88 : index
    %c0_91 = arith.constant 0 : index
    %253 = vector.load %arg4[%c88, %c0_91] : memref<112x128xf32, #tpu.memory_space<vmem>>, vector<1x96xf32>
    %254 = vector.broadcast %253 : vector<1x96xf32> to vector<2x96xf32>
    %255 = arith.addf %252, %254 : vector<2x96xf32>
    %c336 = arith.constant 336 : index
    %c0_92 = arith.constant 0 : index
    %256 = vector.load %arg3[%c336, %c0_92] : memref<400x128xbf16, #tpu.memory_space<vmem>>, vector<32x96xbf16>
    %257 = arith.truncf %202 : vector<2x32xf32> to vector<2x32xbf16>
    %cst_93 = arith.constant dense<0.000000e+00> : vector<2x96xf32>
    %258 = tpu.matmul %257, %256, %cst_93 {dimension_numbers = #tpu.dot_dimension_numbers<[1], [0], [0], [1], [0, 0, 1, 1], [], []>} : vector<2x32xbf16>, vector<32x96xbf16>, vector<2x96xf32> -> vector<2x96xf32>
    %c96_94 = arith.constant 96 : index
    %c0_95 = arith.constant 0 : index
    %259 = vector.load %arg4[%c96_94, %c0_95] : memref<112x128xf32, #tpu.memory_space<vmem>>, vector<1x96xf32>
    %260 = vector.broadcast %259 : vector<1x96xf32> to vector<2x96xf32>
    %261 = arith.addf %258, %260 : vector<2x96xf32>
    %262 = vector.extract_strided_slice %255 {offsets = [0, 0], sizes = [2, 32], strides = [1, 1]} : vector<2x96xf32> to vector<2x32xf32>
    %263 = vector.extract_strided_slice %261 {offsets = [0, 0], sizes = [2, 32], strides = [1, 1]} : vector<2x96xf32> to vector<2x32xf32>
    %264 = arith.addf %262, %263 : vector<2x32xf32>
    %265 = arith.negf %264 : vector<2x32xf32>
    %266 = math.exp %265 : vector<2x32xf32>
    %cst_96 = arith.constant 1.000000e+00 : f32
    %267 = vector.broadcast %cst_96 : f32 to vector<2x32xf32>
    %268 = arith.addf %267, %266 : vector<2x32xf32>
    %269 = arith.divf %267, %268 : vector<2x32xf32>
    %270 = vector.extract_strided_slice %255 {offsets = [0, 32], sizes = [2, 32], strides = [1, 1]} : vector<2x96xf32> to vector<2x32xf32>
    %271 = vector.extract_strided_slice %261 {offsets = [0, 32], sizes = [2, 32], strides = [1, 1]} : vector<2x96xf32> to vector<2x32xf32>
    %272 = arith.addf %270, %271 : vector<2x32xf32>
    %273 = arith.negf %272 : vector<2x32xf32>
    %274 = math.exp %273 : vector<2x32xf32>
    %cst_97 = arith.constant 1.000000e+00 : f32
    %275 = vector.broadcast %cst_97 : f32 to vector<2x32xf32>
    %276 = arith.addf %275, %274 : vector<2x32xf32>
    %277 = arith.divf %275, %276 : vector<2x32xf32>
    %278 = vector.extract_strided_slice %255 {offsets = [0, 64], sizes = [2, 32], strides = [1, 1]} : vector<2x96xf32> to vector<2x32xf32>
    %279 = vector.extract_strided_slice %261 {offsets = [0, 64], sizes = [2, 32], strides = [1, 1]} : vector<2x96xf32> to vector<2x32xf32>
    %280 = arith.mulf %269, %279 : vector<2x32xf32>
    %281 = arith.addf %278, %280 : vector<2x32xf32>
    %282 = math.tanh %281 : vector<2x32xf32>
    %cst_98 = arith.constant 1.000000e+00 : f32
    %283 = vector.broadcast %cst_98 : f32 to vector<2x32xf32>
    %284 = arith.subf %283, %277 : vector<2x32xf32>
    %285 = arith.mulf %284, %282 : vector<2x32xf32>
    %286 = arith.mulf %277, %202 : vector<2x32xf32>
    %287 = arith.addf %285, %286 : vector<2x32xf32>
    %cst_99 = arith.constant 0.000000e+00 : f32
    %288 = vector.broadcast %cst_99 : f32 to vector<2x32xf32>
    %289 = arith.maximumf %287, %288 : vector<2x32xf32>
    %290 = arith.truncf %289 : vector<2x32xf32> to vector<2x32xbf16>
    %cst_100 = arith.constant dense<0.000000e+00> : vector<2x1xf32>
    %291 = tpu.matmul %290, %210, %cst_100 {dimension_numbers = #tpu.dot_dimension_numbers<[1], [0], [0], [1], [0, 0, 1, 1], [], []>} : vector<2x32xbf16>, vector<32x1xbf16>, vector<2x1xf32> -> vector<2x1xf32>
    %292 = arith.truncf %291 : vector<2x1xf32> to vector<2x1xbf16>
    %cst_101 = arith.constant dense<0.000000e+00> : vector<16x1xf32>
    %293 = tpu.matmul %5, %292, %cst_101 {dimension_numbers = #tpu.dot_dimension_numbers<[1], [0], [0], [1], [0, 0, 1, 1], [], []>} : vector<16x2xbf16>, vector<2x1xbf16>, vector<16x1xf32> -> vector<16x1xf32>
    %294 = vector.extract_strided_slice %208 {offsets = [0, 33], sizes = [16, 1], strides = [1, 1]} : vector<16x34xf32> to vector<16x1xf32>
    %295 = arith.addf %294, %293 : vector<16x1xf32>
    %cst_102 = arith.constant 0.000000e+00 : f32
    %296 = vector.broadcast %cst_102 : f32 to vector<16x1xf32>
    %297 = arith.cmpf ogt, %295, %296 : vector<16x1xf32>
    %cst_103 = arith.constant 0.00999999977 : f32
    %298 = vector.broadcast %cst_103 : f32 to vector<16x1xf32>
    %299 = arith.mulf %298, %295 : vector<16x1xf32>
    %300 = arith.select %297, %295, %299 : vector<16x1xi1>, vector<16x1xf32>
    %301 = vector.shape_cast %300 : vector<16x1xf32> to vector<1x16x1xf32>
    %cst_104 = arith.constant dense<0xFF800000> : vector<1xf32>
    %302 = vector.multi_reduction <maximumf>, %301, %cst_104 [1, 2] : vector<1x16x1xf32> to vector<1xf32>
    %303 = vector.shape_cast %302 : vector<1xf32> to vector<1x1x1xf32>
    %304 = vector.extract %303[0, 0, 0] : f32 from vector<1x1x1xf32>
    %305 = vector.broadcast %304 : f32 to vector<16x1xf32>
    %306 = arith.subf %300, %305 : vector<16x1xf32>
    %307 = math.exp %306 : vector<16x1xf32>
    %308 = vector.extract_strided_slice %208 {offsets = [0, 0], sizes = [16, 33], strides = [1, 1]} : vector<16x34xf32> to vector<16x33xf32>
    %309 = vector.broadcast %307 : vector<16x1xf32> to vector<16x33xf32>
    %310 = arith.mulf %308, %309 : vector<16x33xf32>
    %311 = arith.truncf %310 : vector<16x33xf32> to vector<16x33xbf16>
    %cst_105 = arith.constant dense<0.000000e+00> : vector<2x33xf32>
    %312 = tpu.matmul %7, %311, %cst_105 {dimension_numbers = #tpu.dot_dimension_numbers<[1], [0], [0], [1], [0, 0, 1, 1], [], []>} : vector<2x16xbf16>, vector<16x33xbf16>, vector<2x33xf32> -> vector<2x33xf32>
    %313 = vector.extract_strided_slice %312 {offsets = [0, 0], sizes = [2, 32], strides = [1, 1]} : vector<2x33xf32> to vector<2x32xf32>
    %314 = vector.extract_strided_slice %312 {offsets = [0, 32], sizes = [2, 1], strides = [1, 1]} : vector<2x33xf32> to vector<2x1xf32>
    %cst_106 = arith.constant 1.000000e-16 : f32
    %315 = vector.broadcast %cst_106 : f32 to vector<2x1xf32>
    %316 = arith.addf %314, %315 : vector<2x1xf32>
    %317 = vector.broadcast %316 : vector<2x1xf32> to vector<2x32xf32>
    %318 = arith.divf %313, %317 : vector<2x32xf32>
    %319 = vector.broadcast %209 : vector<1x32xf32> to vector<2x32xf32>
    %320 = arith.addf %318, %319 : vector<2x32xf32>
    %cst_107 = arith.constant 0.000000e+00 : f32
    %321 = vector.broadcast %cst_107 : f32 to vector<2x32xf32>
    %322 = arith.cmpf ogt, %320, %321 : vector<2x32xf32>
    %cst_108 = arith.constant 0.000000e+00 : f32
    %323 = vector.broadcast %cst_108 : f32 to vector<2x32xf32>
    %324 = arith.minimumf %320, %323 : vector<2x32xf32>
    %325 = math.exp %324 : vector<2x32xf32>
    %cst_109 = arith.constant 1.000000e+00 : f32
    %326 = vector.broadcast %cst_109 : f32 to vector<2x32xf32>
    %327 = arith.subf %325, %326 : vector<2x32xf32>
    %328 = arith.select %322, %320, %327 : vector<2x32xi1>, vector<2x32xf32>
    %c304_110 = arith.constant 304 : index
    %c0_111 = arith.constant 0 : index
    %329 = vector.load %arg3[%c304_110, %c0_111] : memref<400x128xbf16, #tpu.memory_space<vmem>>, vector<32x96xbf16>
    %330 = arith.truncf %328 : vector<2x32xf32> to vector<2x32xbf16>
    %cst_112 = arith.constant dense<0.000000e+00> : vector<2x96xf32>
    %331 = tpu.matmul %330, %329, %cst_112 {dimension_numbers = #tpu.dot_dimension_numbers<[1], [0], [0], [1], [0, 0, 1, 1], [], []>} : vector<2x32xbf16>, vector<32x96xbf16>, vector<2x96xf32> -> vector<2x96xf32>
    %c88_113 = arith.constant 88 : index
    %c0_114 = arith.constant 0 : index
    %332 = vector.load %arg4[%c88_113, %c0_114] : memref<112x128xf32, #tpu.memory_space<vmem>>, vector<1x96xf32>
    %333 = vector.broadcast %332 : vector<1x96xf32> to vector<2x96xf32>
    %334 = arith.addf %331, %333 : vector<2x96xf32>
    %c336_115 = arith.constant 336 : index
    %c0_116 = arith.constant 0 : index
    %335 = vector.load %arg3[%c336_115, %c0_116] : memref<400x128xbf16, #tpu.memory_space<vmem>>, vector<32x96xbf16>
    %336 = arith.truncf %289 : vector<2x32xf32> to vector<2x32xbf16>
    %cst_117 = arith.constant dense<0.000000e+00> : vector<2x96xf32>
    %337 = tpu.matmul %336, %335, %cst_117 {dimension_numbers = #tpu.dot_dimension_numbers<[1], [0], [0], [1], [0, 0, 1, 1], [], []>} : vector<2x32xbf16>, vector<32x96xbf16>, vector<2x96xf32> -> vector<2x96xf32>
    %c96_118 = arith.constant 96 : index
    %c0_119 = arith.constant 0 : index
    %338 = vector.load %arg4[%c96_118, %c0_119] : memref<112x128xf32, #tpu.memory_space<vmem>>, vector<1x96xf32>
    %339 = vector.broadcast %338 : vector<1x96xf32> to vector<2x96xf32>
    %340 = arith.addf %337, %339 : vector<2x96xf32>
    %341 = vector.extract_strided_slice %334 {offsets = [0, 0], sizes = [2, 32], strides = [1, 1]} : vector<2x96xf32> to vector<2x32xf32>
    %342 = vector.extract_strided_slice %340 {offsets = [0, 0], sizes = [2, 32], strides = [1, 1]} : vector<2x96xf32> to vector<2x32xf32>
    %343 = arith.addf %341, %342 : vector<2x32xf32>
    %344 = arith.negf %343 : vector<2x32xf32>
    %345 = math.exp %344 : vector<2x32xf32>
    %cst_120 = arith.constant 1.000000e+00 : f32
    %346 = vector.broadcast %cst_120 : f32 to vector<2x32xf32>
    %347 = arith.addf %346, %345 : vector<2x32xf32>
    %348 = arith.divf %346, %347 : vector<2x32xf32>
    %349 = vector.extract_strided_slice %334 {offsets = [0, 32], sizes = [2, 32], strides = [1, 1]} : vector<2x96xf32> to vector<2x32xf32>
    %350 = vector.extract_strided_slice %340 {offsets = [0, 32], sizes = [2, 32], strides = [1, 1]} : vector<2x96xf32> to vector<2x32xf32>
    %351 = arith.addf %349, %350 : vector<2x32xf32>
    %352 = arith.negf %351 : vector<2x32xf32>
    %353 = math.exp %352 : vector<2x32xf32>
    %cst_121 = arith.constant 1.000000e+00 : f32
    %354 = vector.broadcast %cst_121 : f32 to vector<2x32xf32>
    %355 = arith.addf %354, %353 : vector<2x32xf32>
    %356 = arith.divf %354, %355 : vector<2x32xf32>
    %357 = vector.extract_strided_slice %334 {offsets = [0, 64], sizes = [2, 32], strides = [1, 1]} : vector<2x96xf32> to vector<2x32xf32>
    %358 = vector.extract_strided_slice %340 {offsets = [0, 64], sizes = [2, 32], strides = [1, 1]} : vector<2x96xf32> to vector<2x32xf32>
    %359 = arith.mulf %348, %358 : vector<2x32xf32>
    %360 = arith.addf %357, %359 : vector<2x32xf32>
    %361 = math.tanh %360 : vector<2x32xf32>
    %cst_122 = arith.constant 1.000000e+00 : f32
    %362 = vector.broadcast %cst_122 : f32 to vector<2x32xf32>
    %363 = arith.subf %362, %356 : vector<2x32xf32>
    %364 = arith.mulf %363, %361 : vector<2x32xf32>
    %365 = arith.mulf %356, %289 : vector<2x32xf32>
    %366 = arith.addf %364, %365 : vector<2x32xf32>
    %cst_123 = arith.constant 0.000000e+00 : f32
    %367 = vector.broadcast %cst_123 : f32 to vector<2x32xf32>
    %368 = arith.maximumf %366, %367 : vector<2x32xf32>
    %c368 = arith.constant 368 : index
    %c0_124 = arith.constant 0 : index
    %369 = vector.load %arg3[%c368, %c0_124] : memref<400x128xbf16, #tpu.memory_space<vmem>>, vector<32x8xbf16>
    %370 = arith.truncf %368 : vector<2x32xf32> to vector<2x32xbf16>
    %cst_125 = arith.constant dense<0.000000e+00> : vector<2x8xf32>
    %371 = tpu.matmul %370, %369, %cst_125 {dimension_numbers = #tpu.dot_dimension_numbers<[1], [0], [0], [1], [0, 0, 1, 1], [], []>} : vector<2x32xbf16>, vector<32x8xbf16>, vector<2x8xf32> -> vector<2x8xf32>
    %c104 = arith.constant 104 : index
    %c0_126 = arith.constant 0 : index
    %372 = vector.load %arg4[%c104, %c0_126] : memref<112x128xf32, #tpu.memory_space<vmem>>, vector<1x8xf32>
    %373 = vector.broadcast %372 : vector<1x8xf32> to vector<2x8xf32>
    %374 = arith.addf %371, %373 : vector<2x8xf32>
    %c0_127 = arith.constant 0 : index
    %c0_128 = arith.constant 0 : index
    %c0_129 = arith.constant 0 : index
    %375 = vector.load %arg5[%c0_127, %c0_128, %c0_129] : memref<1x2x8xf32, #tpu.memory_space<vmem>>, vector<1x2x8xf32>
    %376 = vector.shape_cast %375 : vector<1x2x8xf32> to vector<2x8xf32>
    %377 = vector.shape_cast %374 : vector<2x8xf32> to vector<1x2x8xf32>
    tpu.vector_store %arg5[%c0_127, %c0_128, %c0_129], %377 {strides = array<i32>} : memref<1x2x8xf32, #tpu.memory_space<vmem>>, vector<1x2x8xf32>,
    return
  }
  func.func @transform_0(%arg0: i32) -> (i32, i32, i32) {
    %c0_i32 = arith.constant 0 : i32
    %c0_i32_0 = arith.constant 0 : i32
    %c0_i32_1 = arith.constant 0 : i32
    return %arg0, %c0_i32, %c0_i32_0 : i32, i32, i32
  }
  func.func @transform_1(%arg0: i32) -> (i32, i32, i32) {
    %c0_i32 = arith.constant 0 : i32
    %c0_i32_0 = arith.constant 0 : i32
    %c0_i32_1 = arith.constant 0 : i32
    return %arg0, %c0_i32, %c0_i32_0 : i32, i32, i32
  }
  func.func @transform_2(%arg0: i32) -> (i32, i32) {
    %c0_i32 = arith.constant 0 : i32
    %c0_i32_0 = arith.constant 0 : i32
    %c0_i32_1 = arith.constant 0 : i32
    return %c0_i32, %c0_i32_0 : i32, i32
  }
  func.func @transform_3(%arg0: i32) -> (i32, i32) {
    %c0_i32 = arith.constant 0 : i32
    %c0_i32_0 = arith.constant 0 : i32
    %c0_i32_1 = arith.constant 0 : i32
    return %c0_i32, %c0_i32_0 : i32, i32
  }
  func.func @transform_4(%arg0: i32) -> (i32, i32, i32) {
    %c0_i32 = arith.constant 0 : i32
    %c0_i32_0 = arith.constant 0 : i32
    %c0_i32_1 = arith.constant 0 : i32
    return %arg0, %c0_i32, %c0_i32_0 : i32, i32, i32
  }
}

</mosaic_0001>

<bundles_post_ra>
// kernel: tpu_custom_call.1
= control target key start
LH: loop header
LB: loop body
LE: loop exit
PB: predicated region body
PF: predicated region fallthrough
CT: control target
= control target key end

     0   :  { %9 = vsyncpa [#allocation3], 0  ;;  %s3701_s0 = inlined_call_operand.vmem [shape: f32[8,16,8], index: 0, kind: input, shape index: {}]   ;;  %s3702_s1 = inlined_call_operand.hbm [shape: bf16[8,112,128], index: 1, kind: input, shape index: {}]   ;;  %s3703_s2 = inlined_call_operand.hbm [shape: bf16[400,128], index: 2, kind: input, shape index: {}]   ;;  %s3704_s3 = inlined_call_operand.vmem [shape: f32[112,128], index: 3, kind: input, shape index: {}]   ;;  %s3705_s4 = inlined_call_operand.hbm [shape: f32[8,2,8], index: 4, kind: output, shape index: {}]  }
   0x1   :  { %11 = vsyncpa [#allocation3 + $0x1], 0 }
   0x2   :  { %12 = vsyncpa [#allocation6], 0 }
   0x3   :  { %13 = vsyncpa [#allocation4], 0 }
   0x4   :  { %15 = vsyncpa [#allocation4 + $0x1], 0  ;;  %s3140_s15 = smov 0   ;;  %s3142_s16 = smov 0  }
   0x5   :  { %s3144_s17 = smov 0   ;;  %s3146_s18 = smov 0  }
   0x6 LB: > { %s3161_s19 = sadd.s32 4294967295, %s3096_s18   ;;  %s2401_s20 = sadd.s32 4294967294, %s3096_s18   ;;  %s3096_s18 = sphi %s3146_s18, %s3726_s18   ;;  %s3092_s17 = sphi %s3144_s17, %s3725_s17   ;;  %s3088_s16 = sphi %s3142_s16, %s3724_s16   ;;  %s3084_s15 = sphi %s3140_s15, %s3723_s15  }
   0x7   : > { %p67_p0 = scmp.ne.s32.totalorder %s3088_s16, %s3084_s15  ;;  %p3706_p1 = scmp.eq.s32.totalorder %s3161_s19, 0 }
   0x8   : > { %p139_p3 = scmp.eq.s32.totalorder %s2401_s20, 7  ;;  %p2402_p5 = scmp.ge.s32.totalorder %s3096_s18, 1 }
   0x9   : > { %p3170_p4 = por %p3706_p1, %p67_p0  ;;  %p146_p7 = scmp.lt.s32.totalorder %s3096_s18, 9 }
   0xa   : > { %p3175_p6 = por %p139_p3, %p67_p0  ;;  %s3098_s24 = smov [#allocation5]  }
   0xb   : > { %s3710_s21 = scalar_select %p3170_p4, 1, 0 }
   0xc   : > { %s3711_s22 = scalar_select %p3175_p6, 1, 0 }
   0xd   : > { %p3180_p8 = pnand %p2402_p5, %p146_p7  ;;  %s158_s25 = sshll.u32 %s3098_s24, 4  ;;  %s159_s25 = int_to_ptr.vmem [resolvable:$true] %s158_s25 }
   0xe   : > { %s3193_s27 = sadd.s32 1, %s3096_s18   ;;  %s54_s28 = sadd.s32 1, %s3092_s17 }
   0xf   : > { %s3712_s23 = scalar_select %p3180_p8, 1, 0 }
  0x10   : > { %p2789_p9 = pneg %p3180_p8  ;;  %s51_s29 = ssub.s32 %s3096_s18, %s3193_s27 }
  0x11   : > { %s2985_s30 = scalar_lea.vmem %s159_s25, 3200  ;;  %p2993_p3 = scmp.lt.s32.totalorder %s159_s25, %s159_s25 }
  0x12   : > { %p3188_p10 = pnand %p2789_p9, %p3706_p1  ;;  %p2986_p12 = scmp.ne.s32.totalorder %s159_s25, %s2985_s30 }
  0x13   : > { %p2994_p5 = scmp.lt.s32.totalorder %s2985_s30, %s2985_s30 }
  0x14   : > { %p2976_p11 = pneg %p3188_p10 }
  0x15   : > { %p2995_p7 = por %p2994_p5, %p2993_p3 }
  0x16   : > { %p2988_p13 = pnand %p2986_p12, %p2976_p11 }
  0x18   : > { %p2989_p0 = pneg %p2988_p13 }
  0x1a   : > { %p2996_p2 = pnand %p2995_p7, %p2989_p0 }
  0x1c   : > { %2999 = shalt.err (!%p2996_p2)
}
  0x1d   : > { %s3099_s5 = smov 64   ;;  %s3100_s6 = smov 4  }
  0x1e   : > { %2792 = dma.hbm_to_vmem [thread:$0]  (!%p3188_p10), %s3703_s2, 3200, %s159_s25, [#allocation6], %s3099_s5, %s3099_s5, %s3100_s6  }
  0x1f   : > { %p52_p2 = scmp.eq.s32.totalorder %s51_s29, 0  ;;  %p61_p9 = scmp.ne.s32.totalorder %s3092_s17, %s3088_s16 }
  0x20   : > { %p62_p11 = scmp.eq.s32.totalorder %s3096_s18, 0  ;;  %p2802_p12 = scmp.lt.s32.totalorder %s3096_s18, 8 }
  0x21   : > { %s3213_s9 = scalar_select %p52_p2, %s3092_s17, %s54_s28  }
  0x22   : > { %p63_p13 = por %p62_p11, %p61_p9  ;;  %p3714_p0 = scmp.eq.s32.totalorder %s3161_s19, 7 }
  0x23   : > { %s183_s11 = sand.u32 1, %s3092_s17   ;;  %s2771_s12 = smul.u32 896, %s3096_s18 }
  0x24   : > { %p3217_p3 = por %p3714_p0, %p61_p9  ;;  %s2770_s13 = smul.u32 56, %s183_s11 }
  0x25   : > { %p3223_p5 = pnand %p2802_p12, %p63_p13  ;;  %s3230_s25 = scalar_lea.hbm %s3702_s1, %s2771_s12 }
  0x26   : > { %s3715_s10 = scalar_select %p3217_p3, 1, 0 }
  0x27   : > { %s187_s26 = scalar_lea.vmem [#allocation2], %s2770_s13  ;;  %s3234_s29 = scalar_lea.sflag [#allocation3], %s183_s11 }
  0x28   : > { %s194_s28 = sshll.u32 %s187_s26, 4  ;;  %s3000_s30 = scalar_lea.hbm %s3230_s25, 896  ;;  %s3232_s28 = int_to_ptr.vmem [resolvable:$true] %s194_s28 }
  0x29   : > { %p3001_p10 = scmp.ne.s32.totalorder %s3230_s25, %s3000_s30  ;;  %p3002_p7 = pneg %p3223_p5 }
  0x2a   : > { %s3005_s12 = scalar_lea.hbm %s3702_s1, 7168  ;;  %p3006_p11 = scmp.lt.s32.totalorder %s3230_s25, %s3702_s1 }
  0x2b   : > { %p3003_p2 = pnand %p3002_p7, %p3001_p10  ;;  %p3007_p12 = scmp.lt.s32.totalorder %s3005_s12, %s3000_s30 }
  0x2d   : > { %p3004_p9 = pneg %p3003_p2  ;;  %p3008_p13 = por %p3007_p12, %p3006_p11 }
  0x2f   : > { %p3009_p0 = pnand %p3008_p13, %p3004_p9 }
  0x31   : > { %3012 = shalt.err (!%p3009_p0)
}
  0x32   : > { %s3013_s11 = scalar_lea.vmem %s3232_s28, 896  ;;  %s3101_s13 = smov [#allocation2]  }
  0x33   : > { %p3014_p1 = scmp.ne.s32.totalorder %s3232_s28, %s3013_s11  ;;  %s3018_s26 = sshll.u32 %s3101_s13, 4  ;;  %s3019_s26 = int_to_ptr.vmem [resolvable:$false] %s3018_s26 }
  0x34   : > { %s3020_s7 = scalar_lea.vmem %s3019_s26, 1792  ;;  %p3021_p2 = scmp.lt.s32.totalorder %s3232_s28, %s3019_s26 }
  0x35   : > { %p3016_p6 = pnand %p3014_p1, %p3002_p7  ;;  %p3022_p3 = scmp.lt.s32.totalorder %s3020_s7, %s3013_s11 }
  0x37   : > { %p3017_p10 = pneg %p3016_p6  ;;  %p3023_p4 = por %p3022_p3, %p3021_p2 }
  0x39   : > { %p3024_p8 = pnand %p3023_p4, %p3017_p10 }
  0x3b   : > { %3027 = shalt.err (!%p3024_p8)
}
  0x3c   : > { %2796 = dma.hbm_to_vmem [thread:$0]  (!%p3223_p5), %s3230_s25, 896, %s3232_s28, %s3234_s29, %s3099_s5, %s3099_s5, %s3100_s6  }
  0x3d   : > { %p3717_p1 = scmp.ne.s32.totalorder %s3712_s23, 0 }
  0x3e   : > { %s3261_s30 = sand.u32 (!%p3717_p1), 1, %s3088_s16   ;;  %p3718_p4 = scmp.ne.s32.totalorder (!%p3717_p1), %s3710_s21, 0 }
  0x3f   : > { %206 = sbr.rel (%p3717_p1) target bundleno = 8306 (0x2072), region = 36  ;;  %s209_s12 = scalar_lea.sflag (!%p3717_p1), [#allocation3], %s3261_s30 }
  0x40   : > { %s2772_s8 = smul.u32 (!%p3717_p1), 56, %s3261_s30 }
  0x42   : > { %s3265_s20 = scalar_lea.vmem (!%p3717_p1), [#allocation2], %s2772_s8 }
  0x44   : > { %3071 = dma.done.wait (%p3718_p4), %s209_s12, 896  }
  0x45   : > { %3073 = vsyncadd (%p3718_p4), %s209_s12, 4294966400  ;;  %p3719_p6 = scmp.eq.s32.totalorder %s3161_s19, 0 }
  0x47   : > { %3075 = dma.done.wait (%p3719_p6), [#allocation6], 3200   ;;  %p3720_p8 = pmov %p3719_p6 }
  0x48   : > { %p246_p3 = scmp.lt.s32.totalorder %s3161_s19, 7  ;;  %v3102_v0 = vmov 0.0   ;;  %vm3103_vm0 = vmmov 0   ;;  %vm278_vm1 = vcmask 1043456   ;;  %v267_v1 = vld [vmem:[#allocation5] sm:$0xf] }
  0x49   : > { %3077 = vsyncadd (%p3720_p8), [#allocation6], 4294964096  ;;  %2578 = vmatprep.subr.bf16.mxu0 %v3102_v0  ;;  %2580 = vmatprep.mubr.msk.bf16.mxu0 %vm3103_vm0, %v3102_v0  ;;  %v280_v4 = vsel %vm278_vm1, %v267_v1, 0  ;;  %vm274_vm2 = vcmask 64512   ;;  %v2860_v6 = vld [vmem:[#allocation5 + $0x10] sm:$0xff]   ;;  %v2861_v7 = vld [vmem:[#allocation5 + $0x8] sm:$0xff]  }
  0x4a   : > { %s247_s23 = scalar_select %p246_p3, %s3161_s19, 7  ;;  %2584 = vmatprep.subr.bf16.mxu1 %v3102_v0  ;;  %2588 = vmatprep.mubr.msk.bf16.mxu1 %vm3103_vm0, %v3102_v0  ;;  %v2411_v8 = vld [vmem:[%s3704_s3] ss:$0 sm:$0xff]  ;;  %vm351_vm5 = vcmask 261120   ;;  %vm417_vm6 = vcmask 130048   ;;  %v3315_v30 = vld [vmem:[%s3265_s20 + $0x10] sm:$0xff]  }
  0x4b   : > { %2579 = vmatpush3.bf16.msra.mxu0 %v280_v4  ;;  %2585 = vmatpush3.bf16.msra.mxu1 %v2860_v6  ;;  %v3301_v20 = vld [vmem:[%s3265_s20] sm:$0xff]   ;;  %v2413_v22 = vld [vmem:[%s3704_s3 + $0x8] ss:$0 sm:$0xff]  ;;  %v3318_v31 = vld [vmem:[%s3265_s20 + $0x18] sm:$0xff]   ;;  %s3104_s11 = smov 94   ;;  %s3105_s13 = smov 95  }
  0x4c   : > { %s2503_s21 = sshll.u32 %s247_s23, 4  ;;  %2586 = vmatprep.subr.bf16.mxu1 %v3102_v0  ;;  %v3309_v29 = vld [vmem:[%s3265_s20 + $0x8] sm:$0xff]   ;;  %v2866_v32 = vld [vmem:[#allocation5 + $0x20] sm:$0xff]   ;;  %vm614_vm14 = vcmask 7168   ;;  %s3108_s12 = smov 64  }
  0x4d   : > { %s250_s14 = scalar_lea.vmem %s3701_s0, %s2503_s21  ;;  %v2867_v33 = vld [vmem:[#allocation5 + $0x18] sm:$0xff]   ;;  %s3110_s25 = smov 96  }
  0x4e   : > { %v265_v2 = vld [vmem:[%s250_s14] sm:$0xff]  ;;  %v266_v3 = vld [vmem:[%s250_s14 + $0x8] sm:$0xff]  ;;  %s3109_s14 = smov 32   ;;  %s3111_s24 = smov 127  }
  0x4f   : > { %v268_v5 = vpack.c.bf16 %v266_v3, %v265_v2  ;;  %2587 = vmatpush3.bf16.msra.mxu1 %v2861_v7  ;;  %s3113_s5 = smov 33   ;;  %s2500_s21 = sshll.u32 %s3161_s19, 5 }
  0x50   : > { %2602 = vmatprep.subr.bf16.mxu1 %v2866_v32  ;;  %s2296_s29 = scalar_lea.sflag [#allocation4], %s3261_s30  ;;  %p3721_p7 = scmp.ne.s32.totalorder %s3715_s10, 0 }
  0x51   : > { %2581 = vmatmul.mubr.msk.bf16.vlgmr.msra.gmra.mxu0 %vm274_vm2, %v268_v5 }
  0x52   : > { %2594 = vmatprep.mubr.msk.bf16.mxu0 %vm417_vm6, %v3301_v20 }
 0x111   : > { %v316_v9 = vpop.f32.mrf.mxu0 }
 0x112   : > { %v317_v10 = vadd.f32 %v2411_v8, %v316_v9 }
 0x113   : > { %v2582_v11 = vpop.f32.mrf.mxu0 }
 0x114   : > { %v325_v13 = vmul.f32 0.01, %v317_v10  ;;  %vm323_vm3 = vcmp.gt.f32.partialorder %v317_v10, 0.0 }
 0x115   : > { %v319_v12 = vpop.f32.mrf.mxu0 }
 0x116   : > { %v320_v14 = vadd.f32 %v2411_v8, %v319_v12  ;;  %v3290_v17 = vsel %vm323_vm3, %v317_v10, %v325_v13 }
 0x117   : > { %v2583_v15 = vpop.f32.mrf.mxu0 }
 0x118   : > { %vm324_vm4 = vcmp.gt.f32.partialorder %v320_v14, 0.0  ;;  %v326_v16 = vmul.f32 0.01, %v320_v14 }
 0x11a   : > { %v3292_v18 = vsel %vm324_vm4, %v320_v14, %v326_v16 }
 0x11b   : > { %v3296_v19 = vpack.c.bf16 %v3292_v18, %v3290_v17 }
 0x11d   : > { %2589 = vmatmul.mubr.msk.bf16.vlgmr.msra.gmra.mxu1 %vm351_vm5, %v3296_v19 }
 0x11e   : > { %2603 = vmatpush3.bf16.msra.mxu1 %v2866_v32 }
 0x11f   : > { %2604 = vmatprep.subr.bf16.mxu1 %v2867_v33 }
 0x122   : > { %2605 = vmatpush3.bf16.msra.mxu1 %v2867_v33 }
 0x123   : > { %2610 = vmatprep.subr.bf16.mxu1 %v3102_v0 }
 0x1dd   : > { %v389_v21 = vpop.f32.mrf.mxu1 }
 0x1de   : > { %v390_v25 = vadd.f32 %v2413_v22, %v389_v21 }
 0x1df   : > { %v2590_v23 = vpop.f32.mrf.mxu1 }
 0x1e1   : > { %v392_v24 = vpop.f32.mrf.mxu1 }
 0x1e2   : > { %v393_v26 = vadd.f32 %v2413_v22, %v392_v24  ;;  %v3106_v22 = vmov 0  }
 0x1e3   : > { %v2591_v27 = vpop.f32.mrf.mxu1  ;;  %2852 = vset.pattern.permute.xlu1 %v3106_v22 }
 0x1e4   : > { %v396_v28 = vpack.c.bf16 %v393_v26, %v390_v25 }
 0x1e6   : > { %2592 = vmatprep.subr.bf16.mxu0 %v396_v28 }
 0x1e7   : > { %2593 = vmatpush3.bf16.msra.mxu0 %v396_v28 }
 0x1e8   : > { %2618 = vmatprep.subr.bf16.mxu0 %v3102_v0 }
 0x1ea   : > { %2595 = vmatmul.mubr.msk.bf16.vlgmr.msra.gmra.mxu0 %vm417_vm6, %v3309_v29 }
 0x1eb   : > { %2598 = vmatprep.mubr.msk.bf16.mxu0 %vm417_vm6, %v3315_v30 }
 0x1f2   : > { %2599 = vmatmul.mubr.msk.bf16.gmra.mxu0 %vm417_vm6, %v3318_v31 }
 0x1f3   : > { %2622 = vmatprep.mubr.msk.bf16.mxu0 %vm3103_vm0, %v3102_v0 }
 0x2aa   : > { %v3326_v34 = vpop.f32.mrf.mxu0 }
 0x2ab   : > { %v501_v41 = vmul.f32 0.01, %v3326_v34  ;;  %vm497_vm10 = vcmp.gt.f32.partialorder %v3326_v34, 0.0 }
 0x2ac   : > { %v3329_v35 = vpop.f32.mrf.mxu0 }
 0x2ad   : > { %v499_v37 = vmul.f32 0.01, %v3329_v35  ;;  %vm495_vm7 = vcmp.gt.f32.partialorder %v3329_v35, 0.0  ;;  %v505_v46 = vsel %vm497_vm10, %v3326_v34, %v501_v41 }
 0x2ae   : > { %v3331_v36 = vpop.f32.mrf.mxu0 }
 0x2af   : > { %v502_v39 = vmul.f32 0.01, %v3331_v36  ;;  %vm498_vm9 = vcmp.gt.f32.partialorder %v3331_v36, 0.0  ;;  %v503_v42 = vsel %vm495_vm7, %v3329_v35, %v499_v37 }
 0x2b0   : > { %v3334_v38 = vpop.f32.mrf.mxu0 }
 0x2b1   : > { %v500_v40 = vmul.f32 0.01, %v3334_v38  ;;  %vm496_vm8 = vcmp.gt.f32.partialorder %v3334_v38, 0.0  ;;  %v506_v45 = vsel %vm498_vm9, %v3331_v36, %v502_v39 }
 0x2b2   : > { %v512_v47 = vpack.c.bf16 %v506_v45, %v505_v46  ;;  %v2600_v48 = vpop.f32.mrf.mxu0 }
 0x2b3   : > { %v504_v43 = vsel %vm496_vm8, %v3334_v38, %v500_v40  ;;  %vm1111_vm8 = vcmask 277768  }
 0x2b4   : > { %v511_v44 = vpack.c.bf16 %v504_v43, %v503_v42  ;;  %v480_v49 = vpop.f32.mrf.mxu0 }
 0x2b5   : > { %535 = vrot.lane.b32.xlu1 %v480_v49, %s3105_s13 }
 0x2b6   : > { %515 = vrot.lane.b32.xlu0 %v511_v44, %s3104_s11  ;;  %v2601_v50 = vpop.f32.mrf.mxu0 }
 0x2b8   : > { %v483_v51 = vpop.f32.mrf.mxu0 }
 0x2b9   : > { %537 = vrot.lane.b32.xlu1 %v483_v51, %s3105_s13 }
 0x2ba   : > { %517 = vrot.lane.b32.xlu0 %v512_v47, %s3104_s11 }
 0x2bd   : > { %541 = vrot.lane.b32.xlu1 %v2601_v50, %s3105_s13 }
 0x2be   : > { %539 = vrot.lane.b32.xlu0 %v2600_v48, %s3105_s13 }
 0x327   : > { %v536_v54 = vpop.permute.xlu1 %535 }
 0x328   : > { %v516_v52 = vpop.permute.xlu0 %515 }
 0x329   : > { %2606 = vmatprep.mubr.msk.bf16.mxu1 %vm351_vm5, %v516_v52 }
 0x32b   : > { %v538_v55 = vpop.permute.xlu1 %537 }
 0x32c   : > { %v518_v53 = vpop.permute.xlu0 %517 }
 0x32d   : > { %2607 = vmatmul.mubr.msk.bf16.vlgmr.msra.gmra.mxu1 %vm351_vm5, %v518_v53 }
 0x32e   : > { %2614 = vmatprep.mubr.msk.bf16.mxu1 %vm3103_vm0, %v3102_v0 }
 0x32f   : > { %v542_v61 = vpop.permute.xlu1 %541 }
 0x330   : > { %v540_v56 = vpop.permute.xlu0 %539 }
 0x3ed   : > { %v2608_v57 = vpop.f32.mrf.mxu1 }
 0x3ee   : > { %v596_v58 = vadd.f32 %v2608_v57, %v540_v56 }
 0x3ef   : > { %v587_v59 = vpop.f32.mrf.mxu1 }
 0x3f0   : > { %v588_v60 = vadd.f32 %v587_v59, %v536_v54  ;;  %v608_v62 = vmul.f32 0.01, %v596_v58  ;;  %vm604_vm11 = vcmp.gt.f32.partialorder %v596_v58, 0.0 }
 0x3f1   : > { %v2609_v63 = vpop.f32.mrf.mxu1 }
 0x3f2   : > { %v606_v1 = vmul.f32 0.01, %v588_v60  ;;  %v599_v2 = vadd.f32 %v2609_v63, %v542_v61  ;;  %vm602_vm12 = vcmp.gt.f32.partialorder %v588_v60, 0.0  ;;  %v612_v6 = vsel %vm604_vm11, %v596_v58, %v608_v62  ;;  %v2869_v61 = vld [vmem:[#allocation5 + $0x40] sm:$0xff]  }
 0x3f3   : > { %v590_v3 = vpop.f32.mrf.mxu1  ;;  %v617_v14 = vsel %vm614_vm14, %v612_v6, -inf }
 0x3f4   : > { %vm605_vm13 = vcmp.gt.f32.partialorder %v599_v2, 0.0  ;;  %v609_v4 = vmul.f32 0.01, %v599_v2  ;;  %v591_v5 = vadd.f32 %v590_v3, %v538_v55  ;;  %v610_v7 = vsel %vm602_vm12, %v588_v60, %v606_v1  ;;  %v3357_v60 = vld [vmem:[%s3265_s20 + $0x20] sm:$0xff]  }
 0x3f5   : > { %v615_v12 = vsel %vm614_vm14, %v610_v7, -inf  ;;  %v2438_v3 = vld [vmem:[%s3704_s3 + $0x20] ss:$0 sm:$0xff]  ;;  %vm1610_vm12 = vcmask 1040384  }
 0x3f6   : > { %v613_v8 = vsel %vm605_vm13, %v599_v2, %v609_v4  ;;  %vm603_vm15 = vcmp.gt.f32.partialorder %v591_v5, 0.0  ;;  %v607_v9 = vmul.f32 0.01, %v591_v5  ;;  %vm1606_vm13 = vcmask 15360  }
 0x3f7   : > { %v618_v10 = vsel %vm614_vm14, %v613_v8, -inf }
 0x3f8   : > { %v611_v11 = vsel %vm603_vm15, %v591_v5, %v607_v9  ;;  %v620_v16 = vmax.f32 %v617_v14, %v618_v10  ;;  %v2872_v9 = vld [vmem:[#allocation5 + $0x28] sm:$0xff]  }
 0x3f9   : > { %v616_v13 = vsel %vm614_vm14, %v611_v11, -inf }
 0x3fa   : > { %v619_v15 = vmax.f32 %v615_v12, %v616_v13  ;;  %v2431_v13 = vld [vmem:[%s3704_s3 + $0x10] ss:$0 sm:$0xff] }
 0x3fc   : > { %v621_v21 = vmax.f32 %v619_v15, %v620_v16 }
 0x3fe   : > { %622 = vmax.xlane.f32.xlu0 %v621_v21 }
 0x487   : > { %v623_v23 = vpop.xlane.xlu0 %622 }
 0x488   : > { %v624_v24 = vrot.slane %v623_v23, 4 }
 0x48a   : > { %v625_v25 = vmax.f32 %v623_v23, %v624_v24 }
 0x48c   : > { %v626_v26 = vrot.slane %v625_v25, 2 }
 0x48e   : > { %v627_v27 = vmax.f32 %v625_v25, %v626_v26 }
 0x490   : > { %v628_v28 = vrot.slane %v627_v27, 1 }
 0x492   : > { %v629_v32 = vmax.f32 %v627_v27, %v628_v28 }
 0x494   : > { %2773 = vpush %v629_v32 }
 0x4c5   : > { %s2774_s26 = spop %2773 }
 0x4c6   : > { %v631_v33 = vstv %s2774_s26 }
 0x4c7   : > { %v634_v37 = vsub.f32 %v612_v6, %v631_v33  ;;  %v635_v39 = vsub.f32 %v613_v8, %v631_v33  ;;  %v632_v41 = vsub.f32 %v610_v7, %v631_v33  ;;  %v633_v43 = vsub.f32 %v611_v11, %v631_v33  ;;  %v2871_v8 = vld [vmem:[#allocation5 + $0x30] sm:$0xff]  }
 0x4c8   : > { %2619 = vmatpush3.bf16.msra.mxu0 %v2871_v8 }
 0x4c9   : > { %v640_v40 = vmul.f32 1.442695, %v634_v37  ;;  %v642_v42 = vmul.f32 1.442695, %v635_v39  ;;  %v636_v44 = vmul.f32 1.442695, %v632_v41  ;;  %2620 = vmatprep.subr.bf16.mxu0 %v3102_v0 }
 0x4ca   : > { %v638_v45 = vmul.f32 1.442695, %v633_v43  ;;  %v2434_v41 = vld [vmem:[%s3704_s3 + $0x18] ss:$0 sm:$0xff] }
 0x4cb   : > { %2890 = vpow2.f32 %v640_v40 }
 0x4cc   : > { %2892 = vpow2.f32 %v642_v42  ;;  %2621 = vmatpush3.bf16.msra.mxu0 %v2872_v9 }
 0x4cd   : > { %2894 = vpow2.f32 %v636_v44  ;;  %2634 = vmatprep.subr.bf16.mxu0 %v3102_v0 }
 0x4ce   : > { %2896 = vpow2.f32 %v638_v45 }
 0x4d8   : > { %v2891_v46 = vpop.eup %2890 }
 0x4d9   : > { %656 = vperm.xlu1 %2852, %v2891_v46   ;;  %v2893_v47 = vpop.eup %2892 }
 0x4da   : > { %v2895_v48 = vpop.eup %2894 }
 0x4db   : > { %v2897_v49 = vpop.eup %2896 }
 0x4dd   : > { %661 = vperm.xlu1 %2852, %v2893_v47  }
 0x4e1   : > { %646 = vperm.xlu1 %2852, %v2895_v48  }
 0x4e5   : > { %651 = vperm.xlu1 %2852, %v2897_v49  }
 0x554   : > { %v657_v50 = vpop.permute.xlu1 %656 }
 0x555   : > { %v666_v52 = vmul.f32 %v3326_v34, %v657_v50  ;;  %v2870_v34 = vld [vmem:[#allocation5 + $0x38] sm:$0xff]  }
 0x558   : > { %v662_v51 = vpop.permute.xlu1 %661 }
 0x559   : > { %v667_v53 = vmul.f32 %v3331_v36, %v662_v51 }
 0x55b   : > { %v669_v54 = vpack.c.bf16 %v667_v53, %v666_v52 }
 0x55c   : > { %v647_v55 = vpop.permute.xlu1 %646 }
 0x55d   : > { %2611 = vmatpush3.bf16.msra.mxu1 %v669_v54  ;;  %v664_v57 = vmul.f32 %v647_v55, %v3329_v35  ;;  %v3107_v35 = vmov 32  }
 0x55e   : > { %2612 = vmatprep.subr.bf16.mxu1 %v3102_v0  ;;  %2853 = vset.pattern.permute.xlu1 %v3107_v35 }
 0x560   : > { %v652_v56 = vpop.permute.xlu1 %651 }
 0x561   : > { %v665_v58 = vmul.f32 %v652_v56, %v3334_v38 }
 0x563   : > { %v668_v59 = vpack.c.bf16 %v665_v58, %v664_v57 }
 0x565   : > { %2613 = vmatpush3.bf16.msra.mxu1 %v668_v59 }
 0x566   : > { %2626 = vmatprep.subr.bf16.mxu1 %v3102_v0 }
 0x568   : > { %2615 = vmatmul.mubr.msk.bf16.vlgmr.msra.gmra.mxu1 %vm351_vm5, %v3357_v60 }
 0x569   : > { %2627 = vmatpush3.bf16.msra.mxu1 %v2869_v61  ;;  %2630 = vmatprep.mubr.msk.bf16.mxu1 %vm3103_vm0, %v3102_v0 }
 0x56a   : > { %2628 = vmatprep.subr.bf16.mxu1 %v3102_v0 }
 0x56d   : > { %2629 = vmatpush3.bf16.msra.mxu1 %v2870_v34 }
 0x570   : > { %2631 = vmatmul.mubr.msk.bf16.vlgmr.msra.gmra.mxu1 %vm351_vm5, %v3296_v19 }
 0x571   : > { %2644 = vmatprep.mubr.msk.bf16.mxu1 %vm417_vm6, %v3301_v20 }
 0x628   : > { %v712_v36 = vpop.f32.mrf.mxu1 }
 0x629   : > { %v720_v38 = vadd.f32 1e-16, %v712_v36 }
 0x62a   : > { %v2616_v62 = vpop.f32.mrf.mxu1 }
 0x62b   : > { %724 = vperm.xlu1 %2853, %v720_v38  }
 0x62c   : > { %v715_v63 = vpop.f32.mrf.mxu1 }
 0x62d   : > { %v721_v1 = vadd.f32 1e-16, %v715_v63 }
 0x62e   : > { %v2617_v2 = vpop.f32.mrf.mxu1 }
 0x62f   : > { %729 = vperm.xlu1 %2853, %v721_v1  }
 0x630   : > { %v875_v4 = vpop.f32.mrf.mxu1 }
 0x631   : > { %v876_v19 = vadd.f32 %v2438_v3, %v875_v4  ;;  %v2874_v4 = vld [vmem:[#allocation5 + $0x48] sm:$0xff]  }
 0x632   : > { %v2632_v5 = vpop.f32.mrf.mxu1 }
 0x633   : > { %898 = vrot.lane.b32.xlu1 %v876_v19, %s3108_s12 }
 0x634   : > { %v878_v20 = vpop.f32.mrf.mxu1 }
 0x635   : > { %v879_v6 = vadd.f32 %v2438_v3, %v878_v20  ;;  %v2873_v3 = vld [vmem:[#allocation5 + $0x50] sm:$0xff]  }
 0x636   : > { %v2633_v7 = vpop.f32.mrf.mxu1 }
 0x637   : > { %900 = vrot.lane.b32.xlu1 %v879_v6, %s3108_s12 }
 0x6a6   : > { %v725_v10 = vpop.permute.xlu1 %724 }
 0x6a7   : > { %2898 = vrcp.f32 %v725_v10 }
 0x6aa   : > { %v730_v11 = vpop.permute.xlu1 %729 }
 0x6ab   : > { %2900 = vrcp.f32 %v730_v11 }
 0x6ae   : > { %v899_v56 = vpop.permute.xlu1 %898 }
 0x6b2   : > { %v901_v61 = vpop.permute.xlu1 %900 }
 0x6b4   : > { %v2899_v12 = vpop.eup %2898 }
 0x6b5   : > { %v733_v14 = vmul.f32 %v2899_v12, %v712_v36 }
 0x6b7   : > { %v740_v15 = vadd.f32 %v2431_v13, %v733_v14 }
 0x6b8   : > { %v2901_v16 = vpop.eup %2900 }
 0x6b9   : > { %v744_v21 = vmin.f32 %v740_v15, 0.0  ;;  %v735_v22 = vmul.f32 %v2901_v16, %v715_v63  ;;  %vm742_vm1 = vcmp.gt.f32.partialorder %v740_v15, 0.0 }
 0x6bb   : > { %v746_v23 = vmul.f32 1.442695, %v744_v21  ;;  %v741_v24 = vadd.f32 %v2431_v13, %v735_v22  ;;  %v2444_v22 = vld [vmem:[%s3704_s3 + $0x28] ss:$0 sm:$0xff] }
 0x6bd   : > { %2902 = vpow2.f32 %v746_v23  ;;  %v745_v25 = vmin.f32 %v741_v24, 0.0  ;;  %vm743_vm2 = vcmp.gt.f32.partialorder %v741_v24, 0.0 }
 0x6bf   : > { %v748_v26 = vmul.f32 1.442695, %v745_v25 }
 0x6c1   : > { %2904 = vpow2.f32 %v748_v26 }
 0x6ca   : > { %v2903_v27 = vpop.eup %2902 }
 0x6cb   : > { %v2432_v28 = vadd.f32 -1.0, %v2903_v27 }
 0x6cd   : > { %v752_v37 = vsel %vm742_vm1, %v740_v15, %v2432_v28 }
 0x6ce   : > { %v2905_v32 = vpop.eup %2904 }
 0x6cf   : > { %v2433_v33 = vadd.f32 -1.0, %v2905_v32  ;;  %v2875_v32 = vld [vmem:[#allocation5 + $0x70] sm:$0xff]  }
 0x6d1   : > { %v753_v39 = vsel %vm743_vm2, %v741_v24, %v2433_v33  ;;  %v2876_v33 = vld [vmem:[#allocation5 + $0x68] sm:$0xff]  }
 0x6d2   : > { %v758_v40 = vpack.c.bf16 %v753_v39, %v752_v37 }
 0x6d4   : > { %2623 = vmatmul.mubr.msk.bf16.vlgmr.msra.gmra.mxu0 %vm351_vm5, %v758_v40 }
 0x6d5   : > { %2638 = vmatprep.mubr.msk.bf16.mxu0 %vm3103_vm0, %v3102_v0  ;;  %2635 = vmatpush3.bf16.msra.mxu0 %v2873_v3 }
 0x6d6   : > { %2636 = vmatprep.subr.bf16.mxu0 %v3102_v0 }
 0x6d9   : > { %2637 = vmatpush3.bf16.msra.mxu0 %v2874_v4 }
 0x6da   : > { %2652 = vmatprep.subr.bf16.mxu0 %v3102_v0 }
 0x794   : > { %v813_v42 = vpop.f32.mrf.mxu0 }
 0x795   : > { %v814_v43 = vadd.f32 %v2434_v41, %v813_v42 }
 0x796   : > { %v2624_v44 = vpop.f32.mrf.mxu0 }
 0x797   : > { %v882_v45 = vadd.f32 %v876_v19, %v814_v43 }
 0x798   : > { %v816_v46 = vpop.f32.mrf.mxu0 }
 0x799   : > { %v2442_v47 = vmul.f32 -1.442695, %v882_v45  ;;  %v817_v48 = vadd.f32 %v2434_v41, %v816_v46 }
 0x79a   : > { %v2625_v49 = vpop.f32.mrf.mxu0 }
 0x79b   : > { %2906 = vpow2.f32 %v2442_v47  ;;  %v883_v50 = vadd.f32 %v879_v6, %v817_v48 }
 0x79d   : > { %v2443_v51 = vmul.f32 -1.442695, %v883_v50 }
 0x79f   : > { %2908 = vpow2.f32 %v2443_v51 }
 0x7a8   : > { %v2907_v52 = vpop.eup %2906 }
 0x7a9   : > { %v890_v53 = vadd.f32 1.0, %v2907_v52 }
 0x7ab   : > { %2910 = vrcp.f32 %v890_v53 }
 0x7ac   : > { %v2909_v54 = vpop.eup %2908 }
 0x7ad   : > { %v891_v55 = vadd.f32 1.0, %v2909_v54 }
 0x7af   : > { %2912 = vrcp.f32 %v891_v55 }
 0x7b8   : > { %v2911_v57 = vpop.eup %2910 }
 0x7b9   : > { %v904_v58 = vmul.f32 %v2911_v57, %v899_v56  ;;  %v918_v5 = vsub.f32 1.0, %v2911_v57 }
 0x7bb   : > { %908 = vrot.lane.b32.xlu0 %v904_v58, %s3108_s12 }
 0x7bc   : > { %v2913_v59 = vpop.eup %2912 }
 0x7bd   : > { %v905_v34 = vmul.f32 %v2913_v59, %v901_v61  ;;  %v919_v8 = vsub.f32 1.0, %v2913_v59 }
 0x7bf   : > { %910 = vrot.lane.b32.xlu1 %v905_v34, %s3108_s12 }
 0x7c3   : > { %932 = vrot.lane.b32.xlu1 %v3290_v17, %s3109_s14 }
 0x82d   : > { %v909_v36 = vpop.permute.xlu0 %908 }
 0x82e   : > { %v914_v38 = vadd.f32 %v909_v36, %v814_v43  ;;  %v2460_v43 = vld [vmem:[%s3704_s3 + $0x40] ss:$0 sm:$0xff] }
 0x830   : > { %2914 = vtanh.f32 %v914_v38 }
 0x831   : > { %v911_v62 = vpop.permute.xlu1 %910 }
 0x832   : > { %v915_v63 = vadd.f32 %v911_v62, %v817_v48 }
 0x834   : > { %2916 = vtanh.f32 %v915_v63 }
 0x835   : > { %v933_v17 = vpop.permute.xlu1 %932 }
 0x836   : > { %v938_v7 = vmul.f32 %v2911_v57, %v933_v17 }
 0x83d   : > { %v2915_v1 = vpop.eup %2914 }
 0x83e   : > { %922 = vrot.lane.b32.xlu1 %v2915_v1, %s3110_s25 }
 0x841   : > { %v2917_v2 = vpop.eup %2916 }
 0x842   : > { %924 = vrot.lane.b32.xlu1 %v2917_v2, %s3110_s25 }
 0x846   : > { %934 = vrot.lane.b32.xlu1 %v3292_v18, %s3109_s14 }
 0x8b0   : > { %v923_v19 = vpop.permute.xlu1 %922 }
 0x8b1   : > { %v928_v6 = vmul.f32 %v923_v19, %v918_v5 }
 0x8b3   : > { %v3396_v10 = vadd.f32 %v938_v7, %v928_v6 }
 0x8b4   : > { %v925_v20 = vpop.permute.xlu1 %924 }
 0x8b5   : > { %v929_v11 = vmul.f32 %v925_v20, %v919_v8  ;;  %v942_v14 = vmax.f32 %v3396_v10, 0.0  ;;  %v3112_v20 = vmov 33   ;;  %v3500_v10 = vld [vmem:[#allocation5 + $0x90] sm:$0xff]  }
 0x8b6   : > { %2854 = vset.pattern.permute.xlu1 %v3112_v20  ;;  %2856 = vset.pattern.permute.xlu0 %v3112_v20 }
 0x8b8   : > { %v935_v9 = vpop.permute.xlu1 %934 }
 0x8b9   : > { %v939_v12 = vmul.f32 %v2913_v59, %v935_v9 }
 0x8bb   : > { %v3398_v13 = vadd.f32 %v939_v12, %v929_v11 }
 0x8bd   : > { %v943_v18 = vmax.f32 %v3398_v13, 0.0  ;;  %v3504_v13 = vld [vmem:[#allocation5 + $0x88] sm:$0xff]  }
 0x8bf   : > { %v948_v15 = vpack.c.bf16 %v943_v18, %v942_v14 }
 0x8c1   : > { %955 = vrot.lane.b32.xlu1 %v948_v15, %s3110_s25 }
 0x933   : > { %v956_v16 = vpop.permute.xlu1 %955 }
 0x934   : > { %2639 = vmatmul.mubr.msk.bf16.vlgmr.msra.gmra.mxu0 %vm351_vm5, %v956_v16 }
 0x935   : > { %2656 = vmatprep.mubr.msk.bf16.mxu0 %vm3103_vm0, %v3102_v0 }
 0x9f4   : > { %v1006_v21 = vpop.f32.mrf.mxu0 }
 0x9f5   : > { %v1007_v25 = vadd.f32 %v2444_v22, %v1006_v21 }
 0x9f6   : > { %v2640_v23 = vpop.f32.mrf.mxu0 }
 0x9f8   : > { %v1009_v24 = vpop.f32.mrf.mxu0 }
 0x9f9   : > { %v1010_v26 = vadd.f32 %v2444_v22, %v1009_v24 }
 0x9fa   : > { %v2641_v27 = vpop.f32.mrf.mxu0 }
 0x9fb   : > { %v1013_v28 = vpack.c.bf16 %v1010_v26, %v1007_v25 }
 0x9fd   : > { %2642 = vmatprep.subr.bf16.mxu1 %v1013_v28 }
 0x9fe   : > { %2643 = vmatpush3.bf16.msra.mxu1 %v1013_v28 }
 0x9ff   : > { %2668 = vmatprep.subr.bf16.mxu1 %v3102_v0 }
 0xa01   : > { %2645 = vmatmul.mubr.msk.bf16.vlgmr.msra.gmra.mxu1 %vm417_vm6, %v3309_v29 }
 0xa02   : > { %2648 = vmatprep.mubr.msk.bf16.mxu1 %vm417_vm6, %v3315_v30  ;;  %2669 = vmatpush3.bf16.msra.mxu1 %v2875_v32 }
 0xa03   : > { %2670 = vmatprep.subr.bf16.mxu1 %v3102_v0 }
 0xa06   : > { %2671 = vmatpush3.bf16.msra.mxu1 %v2876_v33 }
 0xa07   : > { %2682 = vmatprep.subr.bf16.mxu1 %v3102_v0 }
 0xa09   : > { %2649 = vmatmul.mubr.msk.bf16.gmra.mxu1 %vm417_vm6, %v3318_v31 }
 0xa0a   : > { %2672 = vmatprep.mubr.msk.bf16.mxu1 %vm3103_vm0, %v3102_v0 }
 0xa11   : > { %2673 = vmatmul.mubr.msk.bf16.vlgmr.msra.gmra.mxu1 %vm351_vm5, %v956_v16 }
 0xa12   : > { %2686 = vmatprep.mubr.msk.bf16.mxu1 %vm3103_vm0, %v3102_v0 }
 0xac1   : > { %v3427_v29 = vpop.f32.mrf.mxu1 }
 0xac3   : > { %v3429_v30 = vpop.f32.mrf.mxu1 }
 0xac5   : > { %v3431_v37 = vpop.f32.mrf.mxu1 }
 0xac7   : > { %v3433_v39 = vpop.f32.mrf.mxu1 }
 0xac9   : > { %v2650_v40 = vpop.f32.mrf.mxu1 }
 0xacb   : > { %v1064_v41 = vpop.f32.mrf.mxu1 }
 0xacc   : > { %1083 = vrot.lane.b32.xlu0 %v1064_v41, %s3111_s24 }
 0xacd   : > { %v2651_v31 = vpop.f32.mrf.mxu1 }
 0xacf   : > { %v1067_v42 = vpop.f32.mrf.mxu1 }
 0xad0   : > { %1087 = vrot.lane.b32.xlu0 %v2650_v40, %s3111_s24  ;;  %1085 = vrot.lane.b32.xlu1 %v1067_v42, %s3111_s24 }
 0xad1   : > { %v1364_v44 = vpop.f32.mrf.mxu1 }
 0xad2   : > { %v3438_v45 = vadd.f32 %v2460_v43, %v1364_v44 }
 0xad3   : > { %v2674_v46 = vpop.f32.mrf.mxu1 }
 0xad4   : > { %1089 = vrot.lane.b32.xlu1 %v2651_v31, %s3111_s24  ;;  %s3114_s24 = smov [#allocation7]  }
 0xad5   : > { %v1367_v47 = vpop.f32.mrf.mxu1  ;;  %s3032_s11 = sshll.u32 %s3114_s24, 4  ;;  %s3033_s11 = int_to_ptr.vmem [resolvable:$false] %s3032_s11 }
 0xad6   : > { %v3448_v5 = vadd.f32 %v2460_v43, %v1367_v47  ;;  %s3034_s13 = scalar_lea.vmem %s3033_s11, 64 }
 0xad7   : > { %v2675_v48 = vpop.f32.mrf.mxu1 }
 0xb3e   : > { %v1084_v49 = vpop.permute.xlu0 %1083 }
 0xb3f   : > { %v1095_v50 = vadd.f32 %v1084_v49, %v3429_v30 }
 0xb41   : > { %v1103_v55 = vmul.f32 0.01, %v1095_v50  ;;  %vm1099_vm4 = vcmp.gt.f32.partialorder %v1095_v50, 0.0 }
 0xb42   : > { %v1088_v51 = vpop.permute.xlu0 %1087  ;;  %v1086_v52 = vpop.permute.xlu1 %1085 }
 0xb43   : > { %v1097_v53 = vadd.f32 %v3427_v29, %v1088_v51  ;;  %v1096_v54 = vadd.f32 %v1086_v52, %v3433_v39  ;;  %v1107_v34 = vsel %vm1099_vm4, %v1095_v50, %v1103_v55 }
 0xb44   : > { %v1112_v1 = vsel %vm1111_vm8, %v1107_v34, -inf }
 0xb45   : > { %v1105_v56 = vmul.f32 0.01, %v1097_v53  ;;  %vm1100_vm3 = vcmp.gt.f32.partialorder %v1096_v54, 0.0  ;;  %v1104_v57 = vmul.f32 0.01, %v1096_v54  ;;  %vm1101_vm7 = vcmp.gt.f32.partialorder %v1097_v53, 0.0 }
 0xb46   : > { %v1090_v58 = vpop.permute.xlu1 %1089 }
 0xb47   : > { %v1108_v59 = vsel %vm1100_vm3, %v1096_v54, %v1104_v57  ;;  %v1098_v61 = vadd.f32 %v3431_v37, %v1090_v58  ;;  %v1109_v36 = vsel %vm1101_vm7, %v1097_v53, %v1105_v56  ;;  %v2453_v58 = vld [vmem:[%s3704_s3 + $0x30] ss:$0 sm:$0xff] }
 0xb48   : > { %v1113_v62 = vsel %vm1111_vm8, %v1108_v59, -inf  ;;  %v1114_v2 = vsel %vm1111_vm8, %v1109_v36, -inf }
 0xb49   : > { %vm1102_vm9 = vcmp.gt.f32.partialorder %v1098_v61, 0.0  ;;  %v1106_v38 = vmul.f32 0.01, %v1098_v61  ;;  %v1116_v4 = vmax.f32 %v1112_v1, %v1113_v62 }
 0xb4b   : > { %v1110_v63 = vsel %vm1102_vm9, %v1098_v61, %v1106_v38 }
 0xb4c   : > { %v1115_v3 = vsel %vm1111_vm8, %v1110_v63, -inf }
 0xb4d   : > { %v1117_v17 = vmax.f32 %v1114_v2, %v1115_v3 }
 0xb4f   : > { %v1118_v19 = vmax.f32 %v1116_v4, %v1117_v17 }
 0xb51   : > { %1119 = vmax.xlane.f32.xlu0 %v1118_v19 }
 0xb67   : > { %1389 = vrot.lane.b32.xlu0 %v3448_v5, %s3108_s12 }
 0xbda   : > { %v1120_v6 = vpop.xlane.xlu0 %1119 }
 0xbdb   : > { %v1121_v7 = vrot.slane %v1120_v6, 4 }
 0xbdd   : > { %v1122_v8 = vmax.f32 %v1120_v6, %v1121_v7 }
 0xbdf   : > { %v1123_v9 = vrot.slane %v1122_v8, 2 }
 0xbe1   : > { %v1124_v11 = vmax.f32 %v1122_v8, %v1123_v9  ;;  %v2456_v8 = vld [vmem:[%s3704_s3 + $0x38] ss:$0 sm:$0xff] }
 0xbe3   : > { %v1125_v12 = vrot.slane %v1124_v11, 1 }
 0xbe5   : > { %v1126_v15 = vmax.f32 %v1124_v11, %v1125_v12 }
 0xbe7   : > { %2775 = vpush %v1126_v15 }
 0xc18   : > { %s2776_s26 = spop %2775 }
 0xc19   : > { %v1128_v16 = vstv %s2776_s26 }
 0xc1a   : > { %v1131_v21 = vsub.f32 %v1109_v36, %v1128_v16  ;;  %v1132_v22 = vsub.f32 %v1110_v63, %v1128_v16  ;;  %v1129_v24 = vsub.f32 %v1107_v34, %v1128_v16  ;;  %v1130_v26 = vsub.f32 %v1108_v59, %v1128_v16 }
 0xc1c   : > { %v1137_v23 = vmul.f32 1.442695, %v1131_v21  ;;  %v1139_v25 = vmul.f32 1.442695, %v1132_v22  ;;  %v1133_v27 = vmul.f32 1.442695, %v1129_v24 }
 0xc1d   : > { %v1135_v28 = vmul.f32 1.442695, %v1130_v26 }
 0xc1e   : > { %2918 = vpow2.f32 %v1137_v23 }
 0xc1f   : > { %2920 = vpow2.f32 %v1139_v25 }
 0xc20   : > { %2922 = vpow2.f32 %v1133_v27 }
 0xc21   : > { %2924 = vpow2.f32 %v1135_v28 }
 0xc2b   : > { %v2919_v32 = vpop.eup %2918 }
 0xc2c   : > { %1153 = vperm.xlu1 %2854, %v2919_v32   ;;  %v2921_v33 = vpop.eup %2920 }
 0xc2d   : > { %v2923_v40 = vpop.eup %2922 }
 0xc2e   : > { %v2925_v41 = vpop.eup %2924 }
 0xc30   : > { %1158 = vperm.xlu1 %2854, %v2921_v33  }
 0xc34   : > { %1143 = vperm.xlu1 %2854, %v2923_v40  }
 0xc38   : > { %1148 = vperm.xlu1 %2854, %v2925_v41  }
 0xc3c   : > { %2855 = vset.pattern.permute.xlu1 %v3107_v35 }
 0xca7   : > { %v1154_v31 = vpop.permute.xlu1 %1153 }
 0xca8   : > { %v1163_v43 = vmul.f32 %v3427_v29, %v1154_v31  ;;  %v1390_v31 = vpop.permute.xlu0 %1389 }
 0xcab   : > { %v1159_v42 = vpop.permute.xlu1 %1158 }
 0xcac   : > { %v1164_v44 = vmul.f32 %v3431_v37, %v1159_v42 }
 0xcae   : > { %v1166_v46 = vpack.c.bf16 %v1164_v44, %v1163_v43 }
 0xcaf   : > { %v1144_v47 = vpop.permute.xlu1 %1143 }
 0xcb0   : > { %2653 = vmatpush3.bf16.msra.mxu0 %v1166_v46  ;;  %v1161_v49 = vmul.f32 %v1144_v47, %v3429_v30  ;;  %v2877_v30 = vld [vmem:[#allocation5 + $0x60] sm:$0xff]  }
 0xcb1   : > { %2654 = vmatprep.subr.bf16.mxu0 %v3102_v0 }
 0xcb3   : > { %v1149_v48 = vpop.permute.xlu1 %1148 }
 0xcb4   : > { %v1162_v50 = vmul.f32 %v1149_v48, %v3433_v39  ;;  %v2878_v39 = vld [vmem:[#allocation5 + $0x58] sm:$0xff]   ;;  %v2879_v48 = vld [vmem:[#allocation5 + $0x80] sm:$0xff]  }
 0xcb5   : > { %2683 = vmatpush3.bf16.msra.mxu1 %v2879_v48 }
 0xcb6   : > { %v1165_v51 = vpack.c.bf16 %v1162_v50, %v1161_v49  ;;  %v2880_v49 = vld [vmem:[#allocation5 + $0x78] sm:$0xff]   ;;  %2684 = vmatprep.subr.bf16.mxu1 %v3102_v0 }
 0xcb8   : > { %2655 = vmatpush3.bf16.msra.mxu0 %v1165_v51 }
 0xcb9   : > { %2660 = vmatprep.subr.bf16.mxu0 %v3102_v0  ;;  %2685 = vmatpush3.bf16.msra.mxu1 %v2880_v49 }
 0xcba   : > { %2698 = vmatprep.subr.bf16.mxu1 %v3102_v0 }
 0xcbb   : > { %2657 = vmatmul.mubr.msk.bf16.vlgmr.msra.gmra.mxu0 %vm351_vm5, %v3357_v60 }
 0xcbc   : > { %2664 = vmatprep.mubr.msk.bf16.mxu0 %vm3103_vm0, %v3102_v0  ;;  %2661 = vmatpush3.bf16.msra.mxu0 %v2877_v30 }
 0xcbd   : > { %2662 = vmatprep.subr.bf16.mxu0 %v3102_v0 }
 0xcc0   : > { %2663 = vmatpush3.bf16.msra.mxu0 %v2878_v39 }
 0xcc1   : > { %2676 = vmatprep.subr.bf16.mxu0 %v3102_v0 }
 0xd7b   : > { %v1201_v29 = vpop.f32.mrf.mxu0 }
 0xd7c   : > { %v1209_v37 = vadd.f32 1e-16, %v1201_v29 }
 0xd7d   : > { %v2658_v52 = vpop.f32.mrf.mxu0 }
 0xd7e   : > { %1213 = vperm.xlu1 %2855, %v1209_v37  }
 0xd7f   : > { %v1204_v53 = vpop.f32.mrf.mxu0 }
 0xd80   : > { %v1210_v54 = vadd.f32 1e-16, %v1204_v53 }
 0xd81   : > { %v2659_v55 = vpop.f32.mrf.mxu0 }
 0xd82   : > { %1218 = vperm.xlu1 %2855, %v1210_v54  }
 0xd86   : > { %1387 = vrot.lane.b32.xlu1 %v3438_v45, %s3108_s12 }
 0xd87   : > { %2858 = vset.pattern.permute.xlu1 %v3112_v20 }
 0xdf9   : > { %v1214_v60 = vpop.permute.xlu1 %1213 }
 0xdfa   : > { %2926 = vrcp.f32 %v1214_v60 }
 0xdfd   : > { %v1219_v56 = vpop.permute.xlu1 %1218 }
 0xdfe   : > { %2928 = vrcp.f32 %v1219_v56 }
 0xe01   : > { %v1388_v40 = vpop.permute.xlu1 %1387 }
 0xe07   : > { %v2927_v57 = vpop.eup %2926 }
 0xe08   : > { %v1222_v59 = vmul.f32 %v2927_v57, %v1201_v29 }
 0xe0a   : > { %v1229_v61 = vadd.f32 %v2453_v58, %v1222_v59 }
 0xe0b   : > { %v2929_v34 = vpop.eup %2928 }
 0xe0c   : > { %v1233_v36 = vmin.f32 %v1229_v61, 0.0  ;;  %v1224_v38 = vmul.f32 %v2929_v34, %v1204_v53  ;;  %vm1231_vm10 = vcmp.gt.f32.partialorder %v1229_v61, 0.0 }
 0xe0e   : > { %v1230_v62 = vadd.f32 %v2453_v58, %v1224_v38  ;;  %v1235_v63 = vmul.f32 1.442695, %v1233_v36 }
 0xe10   : > { %v1234_v1 = vmin.f32 %v1230_v62, 0.0  ;;  %2930 = vpow2.f32 %v1235_v63  ;;  %vm1232_vm11 = vcmp.gt.f32.partialorder %v1230_v62, 0.0 }
 0xe12   : > { %v1237_v2 = vmul.f32 1.442695, %v1234_v1 }
 0xe14   : > { %2932 = vpow2.f32 %v1237_v2 }
 0xe1d   : > { %v2931_v3 = vpop.eup %2930 }
 0xe1e   : > { %v2454_v4 = vadd.f32 -1.0, %v2931_v3 }
 0xe20   : > { %v1241_v20 = vsel %vm1231_vm10, %v1229_v61, %v2454_v4  ;;  %v3491_v61 = vld [vmem:[%s3265_s20 + $0x30] sm:$0x1] }
 0xe21   : > { %v2933_v17 = vpop.eup %2932 }
 0xe22   : > { %v2455_v19 = vadd.f32 -1.0, %v2933_v17 }
 0xe24   : > { %v1242_v6 = vsel %vm1232_vm11, %v1230_v62, %v2455_v19 }
 0xe25   : > { %v1247_v7 = vpack.c.bf16 %v1242_v6, %v1241_v20  ;;  %v3520_v6 = vld [vmem:[%s3265_s20 + $0x28] sm:$0xff]  }
 0xe27   : > { %2665 = vmatmul.mubr.msk.bf16.vlgmr.msra.gmra.mxu0 %vm351_vm5, %v1247_v7 }
 0xe28   : > { %2678 = vmatprep.mubr.msk.bf16.mxu0 %vm3103_vm0, %v3102_v0 }
 0xee7   : > { %v1302_v9 = vpop.f32.mrf.mxu0 }
 0xee8   : > { %v1303_v11 = vadd.f32 %v2456_v8, %v1302_v9 }
 0xee9   : > { %v2666_v12 = vpop.f32.mrf.mxu0 }
 0xeea   : > { %v1371_v15 = vadd.f32 %v3438_v45, %v1303_v11 }
 0xeeb   : > { %v1305_v16 = vpop.f32.mrf.mxu0 }
 0xeec   : > { %v2464_v21 = vmul.f32 -1.442695, %v1371_v15  ;;  %v1306_v22 = vadd.f32 %v2456_v8, %v1305_v16  ;;  %v2467_v16 = vld [vmem:[%s3704_s3 + $0x48] ss:$0 sm:$0xff] }
 0xeed   : > { %v2667_v23 = vpop.f32.mrf.mxu0 }
 0xeee   : > { %2934 = vpow2.f32 %v2464_v21  ;;  %v1372_v24 = vadd.f32 %v3448_v5, %v1306_v22 }
 0xef0   : > { %v2465_v25 = vmul.f32 -1.442695, %v1372_v24 }
 0xef2   : > { %2936 = vpow2.f32 %v2465_v25 }
 0xefb   : > { %v2935_v26 = vpop.eup %2934 }
 0xefc   : > { %v1379_v27 = vadd.f32 1.0, %v2935_v26 }
 0xefe   : > { %2938 = vrcp.f32 %v1379_v27 }
 0xeff   : > { %v2937_v28 = vpop.eup %2936 }
 0xf00   : > { %v1380_v32 = vadd.f32 1.0, %v2937_v28 }
 0xf02   : > { %2940 = vrcp.f32 %v1380_v32 }
 0xf0b   : > { %v2939_v33 = vpop.eup %2938 }
 0xf0c   : > { %v1393_v41 = vmul.f32 %v2939_v33, %v1388_v40  ;;  %v1407_v51 = vsub.f32 1.0, %v2939_v33  ;;  %v1419_v52 = vmul.f32 %v2939_v33, %v942_v14 }
 0xf0e   : > { %1397 = vrot.lane.b32.xlu1 %v1393_v41, %s3108_s12 }
 0xf0f   : > { %v2941_v45 = vpop.eup %2940 }
 0xf10   : > { %v1394_v42 = vmul.f32 %v2941_v45, %v1390_v31  ;;  %v1408_v53 = vsub.f32 1.0, %v2941_v45  ;;  %v1420_v30 = vmul.f32 %v2941_v45, %v943_v18 }
 0xf12   : > { %1399 = vrot.lane.b32.xlu1 %v1394_v42, %s3108_s12 }
 0xf80   : > { %v1398_v43 = vpop.permute.xlu1 %1397 }
 0xf81   : > { %v1403_v5 = vadd.f32 %v1398_v43, %v1303_v11 }
 0xf83   : > { %2942 = vtanh.f32 %v1403_v5 }
 0xf84   : > { %v1400_v44 = vpop.permute.xlu1 %1399 }
 0xf85   : > { %v1404_v46 = vadd.f32 %v1400_v44, %v1306_v22 }
 0xf87   : > { %2944 = vtanh.f32 %v1404_v46 }
 0xf90   : > { %v2943_v47 = vpop.eup %2942 }
 0xf91   : > { %1411 = vrot.lane.b32.xlu1 %v2943_v47, %s3110_s25 }
 0xf94   : > { %v2945_v50 = vpop.eup %2944 }
 0xf95   : > { %1413 = vrot.lane.b32.xlu1 %v2945_v50, %s3110_s25 }
0x1003   : > { %v1412_v29 = vpop.permute.xlu1 %1411 }
0x1004   : > { %v1417_v37 = vmul.f32 %v1412_v29, %v1407_v51 }
0x1006   : > { %v1421_v55 = vadd.f32 %v1419_v52, %v1417_v37 }
0x1007   : > { %v1414_v54 = vpop.permute.xlu1 %1413 }
0x1008   : > { %v1418_v39 = vmul.f32 %v1414_v54, %v1408_v53  ;;  %v1423_v56 = vmax.f32 %v1421_v55, 0.0 }
0x100a   : > { %v1422_v60 = vadd.f32 %v1420_v30, %v1418_v39 }
0x100c   : > { %v1424_v57 = vmax.f32 %v1422_v60, 0.0  ;;  %v3543_v60 = vld [vmem:[#allocation5 + $0xb0] sm:$0xff]  }
0x100e   : > { %v1425_v58 = vpack.c.bf16 %v1424_v57, %v1423_v56  ;;  %v3549_v56 = vld [vmem:[#allocation5 + $0xa8] sm:$0xff]  }
0x1010   : > { %1427 = vrot.lane.b32.xlu1 %v1425_v58, %s3110_s25 }
0x1082   : > { %v1428_v59 = vpop.permute.xlu1 %1427 }
0x1083   : > { %2677 = vmatpush3.bf16.msra.mxu0 %v1428_v59  ;;  %2687 = vmatmul.mubr.msk.bf16.vlgmr.msra.gmra.mxu1 %vm351_vm5, %v1428_v59 }
0x1084   : > { %2690 = vmatprep.subr.bf16.mxu0 %v3102_v0  ;;  %2700 = vmatprep.mubr.msk.bf16.mxu1 %vm3103_vm0, %v3102_v0 }
0x1086   : > { %2679 = vmatmul.mubr.msk.bf16.vlgmr.msra.gmra.mxu0 %vm417_vm6, %v3491_v61 }
0x1087   : > { %2694 = vmatprep.mubr.msk.bf16.mxu0 %vm3103_vm0, %v3102_v0  ;;  %2691 = vmatpush3.bf16.msra.mxu0 %v3500_v10 }
0x1088   : > { %2692 = vmatprep.subr.bf16.mxu0 %v3102_v0 }
0x108b   : > { %2693 = vmatpush3.bf16.msra.mxu0 %v3504_v13 }
0x108c   : > { %2704 = vmatprep.subr.bf16.mxu0 %v3102_v0 }
0x1143   : > { %v1532_v14 = vpop.f32.mrf.mxu1 }
0x1144   : > { %v3532_v21 = vadd.f32 %v2467_v16, %v1532_v14 }
0x1145   : > { %v2688_v18 = vpop.f32.mrf.mxu1 }
0x1146   : > { %v1467_v34 = vpop.f32.mrf.mxu0 }
0x1147   : > { %v3508_v36 = vmax.f32 %v1467_v34, 0.0  ;;  %v1535_v38 = vpop.f32.mrf.mxu1  ;;  %v3563_v34 = vld [vmem:[%s3704_s3 + $0x60] ss:$0 sm:$0xff] }
0x1148   : > { %v2680_v62 = vpop.f32.mrf.mxu0  ;;  %v3535_v24 = vadd.f32 %v2467_v16, %v1535_v38 }
0x1149   : > { %v3512_v63 = vpack.c.bf16 %v3508_v36, %v3508_v36  ;;  %v2689_v1 = vpop.f32.mrf.mxu1 }
0x114a   : > { %v1470_v2 = vpop.f32.mrf.mxu0 }
0x114b   : > { %2695 = vmatmul.mubr.msk.bf16.vlgmr.msra.gmra.mxu0 %vm351_vm5, %v3512_v63 }
0x114c   : > { %v2681_v3 = vpop.f32.mrf.mxu0  ;;  %2706 = vmatprep.mubr.msk.bf16.mxu0 %vm3103_vm0, %v3102_v0 }
0x114d   : > { %v3567_v3 = vld [vmem:[#allocation5 + $0xa0] sm:$0xff]  }
0x120b   : > { %v1594_v4 = vpop.f32.mrf.mxu0 }
0x120c   : > { %v1600_v17 = vpack.c.bf16 %v1594_v4, %v1594_v4  ;;  %v3570_v4 = vld [vmem:[#allocation5 + $0x98] sm:$0xff]  }
0x120d   : > { %v2696_v19 = vpop.f32.mrf.mxu0 }
0x120e   : > { %v1612_v20 = vsel %vm1610_vm12, %v1600_v17, 0 }
0x120f   : > { %v1597_v7 = vpop.f32.mrf.mxu0  ;;  %2699 = vmatpush3.bf16.msra.mxu1 %v1612_v20  ;;  %v3578_v20 = vld [vmem:[%s3704_s3 + $0x50] ss:$0 sm:$0xff] }
0x1210   : > { %2710 = vmatprep.subr.bf16.mxu1 %v3102_v0 }
0x1211   : > { %v2697_v8 = vpop.f32.mrf.mxu0 }
0x1212   : > { %2701 = vmatmul.mubr.msk.bf16.vlgmr.msra.gmra.mxu1 %vm1606_vm13, %v3520_v6 }
0x1213   : > { %2714 = vmatprep.mubr.msk.bf16.mxu1 %vm3103_vm0, %v3102_v0  ;;  %2711 = vmatpush3.bf16.msra.mxu1 %v3567_v3 }
0x1214   : > { %2712 = vmatprep.subr.bf16.mxu1 %v3102_v0 }
0x1217   : > { %2713 = vmatpush3.bf16.msra.mxu1 %v3570_v4 }
0x1218   : > { %2726 = vmatprep.subr.bf16.mxu1 %v3102_v0 }
0x12d2   : > { %v1648_v9 = vpop.f32.mrf.mxu1 }
0x12d3   : > { %1657 = vrot.lane.b32.xlu1 %v1648_v9, %s3113_s5 }
0x12d4   : > { %v2702_v11 = vpop.f32.mrf.mxu1 }
0x12d6   : > { %v1651_v12 = vpop.f32.mrf.mxu1 }
0x12d7   : > { %1659 = vrot.lane.b32.xlu0 %v1651_v12, %s3113_s5 }
0x12d8   : > { %v2703_v15 = vpop.f32.mrf.mxu1 }
0x1345   : > { %v1658_v22 = vpop.permute.xlu1 %1657 }
0x1346   : > { %v1663_v23 = vadd.f32 %v1658_v22, %v3532_v21 }
0x1348   : > { %v1667_v25 = vmul.f32 0.01, %v1663_v23  ;;  %vm1665_vm14 = vcmp.gt.f32.partialorder %v1663_v23, 0.0 }
0x1349   : > { %v1660_v26 = vpop.permute.xlu0 %1659 }
0x134a   : > { %v1664_v27 = vadd.f32 %v1660_v26, %v3535_v24  ;;  %v1669_v32 = vsel %vm1665_vm14, %v1663_v23, %v1667_v25  ;;  %v3591_v23 = vld [vmem:[%s3704_s3 + $0x58] ss:$0 sm:$0xff] }
0x134b   : > { %v1671_v40 = vsel %vm1111_vm8, %v1669_v32, -inf }
0x134c   : > { %vm1666_vm15 = vcmp.gt.f32.partialorder %v1664_v27, 0.0  ;;  %v1668_v28 = vmul.f32 0.01, %v1664_v27 }
0x134e   : > { %v1670_v33 = vsel %vm1666_vm15, %v1664_v27, %v1668_v28 }
0x134f   : > { %v1672_v41 = vsel %vm1111_vm8, %v1670_v33, -inf }
0x1350   : > { %v1673_v45 = vmax.f32 %v1671_v40, %v1672_v41 }
0x1352   : > { %1674 = vmax.xlane.f32.xlu1 %v1673_v45 }
0x13db   : > { %v1675_v31 = vpop.xlane.xlu1 %1674 }
0x13dc   : > { %v1676_v42 = vrot.slane %v1675_v31, 4 }
0x13de   : > { %v1677_v43 = vmax.f32 %v1675_v31, %v1676_v42 }
0x13e0   : > { %v1678_v5 = vrot.slane %v1677_v43, 2 }
0x13e2   : > { %v1679_v44 = vmax.f32 %v1677_v43, %v1678_v5 }
0x13e4   : > { %v1680_v46 = vrot.slane %v1679_v44, 1 }
0x13e6   : > { %v1681_v47 = vmax.f32 %v1679_v44, %v1680_v46 }
0x13e8   : > { %2777 = vpush %v1681_v47 }
0x1419   : > { %s2778_s28 = spop %2777 }
0x141a   : > { %v1683_v48 = vstv %s2778_s28 }
0x141b   : > { %v1684_v49 = vsub.f32 %v1669_v32, %v1683_v48  ;;  %v1685_v50 = vsub.f32 %v1670_v33, %v1683_v48 }
0x141d   : > { %v1686_v51 = vmul.f32 1.442695, %v1684_v49  ;;  %v1688_v29 = vmul.f32 1.442695, %v1685_v50 }
0x141f   : > { %2946 = vpow2.f32 %v1686_v51 }
0x1420   : > { %2948 = vpow2.f32 %v1688_v29 }
0x142c   : > { %v2947_v37 = vpop.eup %2946 }
0x142d   : > { %1692 = vperm.xlu0 %2856, %v2947_v37   ;;  %v2949_v52 = vpop.eup %2948 }
0x1431   : > { %1697 = vperm.xlu0 %2856, %v2949_v52  }
0x1435   : > { %2857 = vset.pattern.permute.xlu0 %v3107_v35 }
0x14a8   : > { %v1693_v53 = vpop.permute.xlu0 %1692 }
0x14a9   : > { %v1700_v55 = vmul.f32 %v1693_v53, %v3532_v21 }
0x14ac   : > { %v1698_v54 = vpop.permute.xlu0 %1697 }
0x14ad   : > { %v1701_v30 = vmul.f32 %v1698_v54, %v3535_v24 }
0x14af   : > { %v1702_v39 = vpack.c.bf16 %v1701_v30, %v1700_v55 }
0x14b1   : > { %2705 = vmatpush3.bf16.msra.mxu0 %v1702_v39 }
0x14b2   : > { %2718 = vmatprep.subr.bf16.mxu0 %v3102_v0 }
0x14b4   : > { %2707 = vmatmul.mubr.msk.bf16.vlgmr.msra.gmra.mxu0 %vm417_vm6, %v3491_v61 }
0x14b5   : > { %2719 = vmatpush3.bf16.msra.mxu0 %v3543_v60  ;;  %2722 = vmatprep.mubr.msk.bf16.mxu0 %vm3103_vm0, %v3102_v0 }
0x14b6   : > { %2720 = vmatprep.subr.bf16.mxu0 %v3102_v0 }
0x14b9   : > { %2721 = vmatpush3.bf16.msra.mxu0 %v3549_v56 }
0x14ba   : > { %2734 = vmatprep.subr.bf16.mxu0 %v3102_v0 }
0x14bc   : > { %2723 = vmatmul.mubr.msk.bf16.vlgmr.msra.gmra.mxu0 %vm351_vm5, %v3512_v63 }
0x14bd   : > { %2736 = vmatprep.mubr.msk.bf16.mxu0 %vm3103_vm0, %v3102_v0 }
0x1574   : > { %v1737_v57 = vpop.f32.mrf.mxu0 }
0x1575   : > { %v1743_v58 = vadd.f32 1e-16, %v1737_v57 }
0x1576   : > { %v2708_v59 = vpop.f32.mrf.mxu0 }
0x1577   : > { %1746 = vperm.xlu0 %2857, %v1743_v58  }
0x1578   : > { %v1740_v14 = vpop.f32.mrf.mxu0 }
0x157a   : > { %v2709_v18 = vpop.f32.mrf.mxu0 }
0x157c   : > { %v1882_v38 = vpop.f32.mrf.mxu0 }
0x157d   : > { %v1883_v62 = vadd.f32 %v3563_v34, %v1882_v38 }
0x157e   : > { %v2724_v1 = vpop.f32.mrf.mxu0 }
0x157f   : > { %1896 = vrot.lane.b32.xlu0 %v1883_v62, %s3108_s12 }
0x1580   : > { %v1885_v63 = vpop.f32.mrf.mxu0 }
0x1582   : > { %v2725_v2 = vpop.f32.mrf.mxu0 }
0x15f2   : > { %v1747_v17 = vpop.permute.xlu0 %1746 }
0x15f3   : > { %2950 = vrcp.f32 %v1747_v17 }
0x15f6   : > { %v1897_v45 = vpop.permute.xlu0 %1896 }
0x1600   : > { %v2951_v19 = vpop.eup %2950 }
0x1601   : > { %v1750_v7 = vmul.f32 %v2951_v19, %v1737_v57 }
0x1603   : > { %v1755_v8 = vadd.f32 %v3578_v20, %v1750_v7 }
0x1605   : > { %v1757_v9 = vmin.f32 %v1755_v8, 0.0  ;;  %vm1756_vm1 = vcmp.gt.f32.partialorder %v1755_v8, 0.0 }
0x1607   : > { %v1758_v11 = vmul.f32 1.442695, %v1757_v9 }
0x1609   : > { %2952 = vpow2.f32 %v1758_v11 }
0x1616   : > { %v2953_v12 = vpop.eup %2952 }
0x1617   : > { %v2478_v15 = vadd.f32 -1.0, %v2953_v12 }
0x1619   : > { %v1761_v16 = vsel %vm1756_vm1, %v1755_v8, %v2478_v15 }
0x161a   : > { %v1766_v22 = vpack.c.bf16 %v1761_v16, %v1761_v16 }
0x161c   : > { %2715 = vmatmul.mubr.msk.bf16.vlgmr.msra.gmra.mxu1 %vm351_vm5, %v1766_v22 }
0x161d   : > { %2727 = vmatpush3.bf16.msra.mxu1 %v3500_v10  ;;  %2730 = vmatprep.mubr.msk.bf16.mxu1 %vm3103_vm0, %v3102_v0 }
0x161e   : > { %2728 = vmatprep.subr.bf16.mxu1 %v3102_v0 }
0x1621   : > { %2729 = vmatpush3.bf16.msra.mxu1 %v3504_v13 }
0x1622   : > { %2740 = vmatprep.subr.bf16.mxu1 %v3102_v0 }
0x16dc   : > { %v1821_v25 = vpop.f32.mrf.mxu1 }
0x16dd   : > { %v1822_v26 = vadd.f32 %v3591_v23, %v1821_v25 }
0x16de   : > { %v2716_v27 = vpop.f32.mrf.mxu1 }
0x16df   : > { %v1888_v28 = vadd.f32 %v1883_v62, %v1822_v26 }
0x16e0   : > { %v1824_v10 = vpop.f32.mrf.mxu1 }
0x16e1   : > { %v2487_v32 = vmul.f32 -1.442695, %v1888_v28 }
0x16e2   : > { %v2717_v33 = vpop.f32.mrf.mxu1 }
0x16e3   : > { %2954 = vpow2.f32 %v2487_v32 }
0x16f0   : > { %v2955_v40 = vpop.eup %2954 }
0x16f1   : > { %v1892_v41 = vadd.f32 1.0, %v2955_v40 }
0x16f3   : > { %2956 = vrcp.f32 %v1892_v41 }
0x1700   : > { %v2957_v13 = vpop.eup %2956 }
0x1701   : > { %v1899_v31 = vmul.f32 %v2957_v13, %v1897_v45  ;;  %v1906_v46 = vsub.f32 1.0, %v2957_v13 }
0x1703   : > { %1901 = vrot.lane.b32.xlu0 %v1899_v31, %s3108_s12 }
0x1775   : > { %v1902_v42 = vpop.permute.xlu0 %1901 }
0x1776   : > { %v1904_v43 = vadd.f32 %v1902_v42, %v1822_v26 }
0x1778   : > { %2958 = vtanh.f32 %v1904_v43 }
0x1785   : > { %v2959_v5 = vpop.eup %2958 }
0x1786   : > { %1908 = vrot.lane.b32.xlu0 %v2959_v5, %s3110_s25 }
0x178a   : > { %1913 = vrot.lane.b32.xlu0 %v3508_v36, %s3109_s14 }
0x17f8   : > { %v1909_v44 = vpop.permute.xlu0 %1908 }
0x17f9   : > { %v1911_v48 = vmul.f32 %v1909_v44, %v1906_v46 }
0x17fc   : > { %v1914_v47 = vpop.permute.xlu0 %1913 }
0x17fd   : > { %v1916_v49 = vmul.f32 %v2957_v13, %v1914_v47 }
0x17ff   : > { %v1917_v50 = vadd.f32 %v1916_v49, %v1911_v48 }
0x1801   : > { %v3598_v51 = vmax.f32 %v1917_v50, 0.0 }
0x1803   : > { %v1919_v29 = vpack.c.bf16 %v3598_v51, %v3598_v51 }
0x1805   : > { %1921 = vrot.lane.b32.xlu1 %v1919_v29, %s3110_s25 }
0x1877   : > { %v3603_v37 = vpop.permute.xlu1 %1921 }
0x1878   : > { %2731 = vmatmul.mubr.msk.bf16.vlgmr.msra.gmra.mxu1 %vm351_vm5, %v3603_v37 }
0x1879   : > { %2742 = vmatprep.mubr.msk.bf16.mxu1 %vm3103_vm0, %v3102_v0 }
0x1938   : > { %v1960_v36 = vpop.f32.mrf.mxu1 }
0x1939   : > { %v1966_v52 = vpack.c.bf16 %v1960_v36, %v1960_v36 }
0x193a   : > { %v2732_v53 = vpop.f32.mrf.mxu1 }
0x193b   : > { %v1968_v54 = vsel %vm1610_vm12, %v1966_v52, 0 }
0x193c   : > { %v1963_v55 = vpop.f32.mrf.mxu1  ;;  %2735 = vmatpush3.bf16.msra.mxu0 %v1968_v54 }
0x193d   : > { %2746 = vmatprep.subr.bf16.mxu0 %v3102_v0 }
0x193e   : > { %v2733_v30 = vpop.f32.mrf.mxu1 }
0x193f   : > { %2737 = vmatmul.mubr.msk.bf16.vlgmr.msra.gmra.mxu0 %vm1606_vm13, %v3520_v6 }
0x1940   : > { %2747 = vmatpush3.bf16.msra.mxu0 %v3567_v3  ;;  %2750 = vmatprep.mubr.msk.bf16.mxu0 %vm3103_vm0, %v3102_v0 }
0x1941   : > { %2748 = vmatprep.subr.bf16.mxu0 %v3102_v0 }
0x1944   : > { %2749 = vmatpush3.bf16.msra.mxu0 %v3570_v4 }
0x1945   : > { %2762 = vmatprep.subr.bf16.mxu0 %v3102_v0 }
0x19ff   : > { %v2004_v39 = vpop.f32.mrf.mxu0 }
0x1a00   : > { %2013 = vrot.lane.b32.xlu0 %v2004_v39, %s3113_s5 }
0x1a01   : > { %v2738_v57 = vpop.f32.mrf.mxu0 }
0x1a03   : > { %v2007_v58 = vpop.f32.mrf.mxu0 }
0x1a04   : > { %2015 = vrot.lane.b32.xlu0 %v2007_v58, %s3113_s5 }
0x1a05   : > { %v2739_v59 = vpop.f32.mrf.mxu0 }
0x1a72   : > { %v2014_v6 = vpop.permute.xlu0 %2013 }
0x1a73   : > { %v2019_v14 = vadd.f32 %v2014_v6, %v3532_v21 }
0x1a75   : > { %v2023_v18 = vmul.f32 0.01, %v2019_v14  ;;  %vm2021_vm2 = vcmp.gt.f32.partialorder %v2019_v14, 0.0 }
0x1a76   : > { %v2016_v38 = vpop.permute.xlu0 %2015 }
0x1a77   : > { %v2020_v62 = vadd.f32 %v2016_v38, %v3535_v24  ;;  %v2025_v63 = vsel %vm2021_vm2, %v2019_v14, %v2023_v18  ;;  %v2888_v38 = vld [vmem:[#allocation5 + $0xc0] sm:$0xff]  }
0x1a78   : > { %v2027_v3 = vsel %vm1111_vm8, %v2025_v63, -inf }
0x1a79   : > { %vm2022_vm3 = vcmp.gt.f32.partialorder %v2020_v62, 0.0  ;;  %v2024_v1 = vmul.f32 0.01, %v2020_v62 }
0x1a7b   : > { %v2026_v2 = vsel %vm2022_vm3, %v2020_v62, %v2024_v1 }
0x1a7c   : > { %v2028_v4 = vsel %vm1111_vm8, %v2026_v2, -inf }
0x1a7d   : > { %v2029_v17 = vmax.f32 %v2027_v3, %v2028_v4 }
0x1a7f   : > { %2030 = vmax.xlane.f32.xlu0 %v2029_v17 }
0x1b08   : > { %v2031_v19 = vpop.xlane.xlu0 %2030 }
0x1b09   : > { %v2032_v7 = vrot.slane %v2031_v19, 4 }
0x1b0b   : > { %v2033_v8 = vmax.f32 %v2031_v19, %v2032_v7 }
0x1b0d   : > { %v2034_v9 = vrot.slane %v2033_v8, 2 }
0x1b0f   : > { %v2035_v11 = vmax.f32 %v2033_v8, %v2034_v9 }
0x1b11   : > { %v2036_v12 = vrot.slane %v2035_v11, 1 }
0x1b13   : > { %v2037_v15 = vmax.f32 %v2035_v11, %v2036_v12 }
0x1b15   : > { %2779 = vpush %v2037_v15 }
0x1b46   : > { %s2780_s14 = spop %2779 }
0x1b47   : > { %v2039_v16 = vstv %s2780_s14 }
0x1b48   : > { %v2040_v22 = vsub.f32 %v2025_v63, %v2039_v16  ;;  %v2041_v25 = vsub.f32 %v2026_v2, %v2039_v16 }
0x1b4a   : > { %v2042_v26 = vmul.f32 1.442695, %v2040_v22  ;;  %v2044_v27 = vmul.f32 1.442695, %v2041_v25 }
0x1b4c   : > { %2960 = vpow2.f32 %v2042_v26 }
0x1b4d   : > { %2962 = vpow2.f32 %v2044_v27 }
0x1b59   : > { %v2961_v28 = vpop.eup %2960 }
0x1b5a   : > { %2048 = vperm.xlu1 %2858, %v2961_v28   ;;  %v2963_v10 = vpop.eup %2962 }
0x1b5e   : > { %2053 = vperm.xlu1 %2858, %v2963_v10  }
0x1b62   : > { %2859 = vset.pattern.permute.xlu1 %v3107_v35 }
0x1bd5   : > { %v2049_v32 = vpop.permute.xlu1 %2048 }
0x1bd6   : > { %v2056_v40 = vmul.f32 %v2049_v32, %v3532_v21 }
0x1bd9   : > { %v2054_v33 = vpop.permute.xlu1 %2053 }
0x1bda   : > { %v2057_v41 = vmul.f32 %v2054_v33, %v3535_v24 }
0x1bdc   : > { %v2058_v13 = vpack.c.bf16 %v2057_v41, %v2056_v40 }
0x1bde   : > { %2741 = vmatpush3.bf16.msra.mxu1 %v2058_v13 }
0x1bdf   : > { %2754 = vmatprep.subr.bf16.mxu1 %v3102_v0 }
0x1be1   : > { %2743 = vmatmul.mubr.msk.bf16.vlgmr.msra.gmra.mxu1 %vm417_vm6, %v3491_v61 }
0x1be2   : > { %2755 = vmatpush3.bf16.msra.mxu1 %v3543_v60  ;;  %2758 = vmatprep.mubr.msk.bf16.mxu1 %vm3103_vm0, %v3102_v0 }
0x1be3   : > { %2756 = vmatprep.subr.bf16.mxu1 %v3102_v0 }
0x1be6   : > { %2757 = vmatpush3.bf16.msra.mxu1 %v3549_v56 }
0x1be9   : > { %2759 = vmatmul.mubr.msk.bf16.vlgmr.msra.gmra.mxu1 %vm351_vm5, %v3603_v37 }
0x1ca1   : > { %v2093_v35 = vpop.f32.mrf.mxu1 }
0x1ca2   : > { %v2099_v21 = vadd.f32 1e-16, %v2093_v35 }
0x1ca3   : > { %v2744_v24 = vpop.f32.mrf.mxu1 }
0x1ca4   : > { %2102 = vperm.xlu1 %2859, %v2099_v21  }
0x1ca5   : > { %v2096_v45 = vpop.f32.mrf.mxu1 }
0x1ca7   : > { %v2745_v31 = vpop.f32.mrf.mxu1 }
0x1ca9   : > { %v2192_v42 = vpop.f32.mrf.mxu1 }
0x1caa   : > { %v2193_v61 = vadd.f32 %v3563_v34, %v2192_v42 }
0x1cab   : > { %v2760_v60 = vpop.f32.mrf.mxu1 }
0x1cac   : > { %2206 = vrot.lane.b32.xlu1 %v2193_v61, %s3108_s12 }
0x1cad   : > { %v2195_v43 = vpop.f32.mrf.mxu1 }
0x1caf   : > { %v2761_v5 = vpop.f32.mrf.mxu1 }
0x1d1f   : > { %v2103_v44 = vpop.permute.xlu1 %2102 }
0x1d20   : > { %2964 = vrcp.f32 %v2103_v44 }
0x1d23   : > { %v2207_v59 = vpop.permute.xlu1 %2206 }
0x1d2d   : > { %v2965_v56 = vpop.eup %2964 }
0x1d2e   : > { %v2106_v46 = vmul.f32 %v2965_v56, %v2093_v35 }
0x1d30   : > { %v2107_v47 = vadd.f32 %v3578_v20, %v2106_v46 }
0x1d32   : > { %v2109_v48 = vmin.f32 %v2107_v47, 0.0  ;;  %vm2108_vm6 = vcmp.gt.f32.partialorder %v2107_v47, 0.0 }
0x1d34   : > { %v2110_v49 = vmul.f32 1.442695, %v2109_v48 }
0x1d36   : > { %2966 = vpow2.f32 %v2110_v49 }
0x1d43   : > { %v2967_v50 = vpop.eup %2966 }
0x1d44   : > { %v2491_v29 = vadd.f32 -1.0, %v2967_v50 }
0x1d46   : > { %v2113_v37 = vsel %vm2108_vm6, %v2107_v47, %v2491_v29 }
0x1d47   : > { %v2114_v36 = vpack.c.bf16 %v2113_v37, %v2113_v37 }
0x1d49   : > { %2751 = vmatmul.mubr.msk.bf16.vlgmr.msra.gmra.mxu0 %vm351_vm5, %v2114_v36 }
0x1d4a   : > { %2766 = vmatprep.mubr.msk.bf16.mxu0 %vm3103_vm0, %v3102_v0  ;;  %2763 = vmatpush3.bf16.msra.mxu0 %v2888_v38  ;;  %vm2293_vm0 = vcmask 58368  }
0x1d4b   : > { %2764 = vmatprep.subr.bf16.mxu0 %v3102_v0  ;;  %v2495_v0 = vld [vmem:[%s3704_s3 + $0x68] ss:$0 sm:$0xff] }
0x1e09   : > { %v2152_v34 = vpop.f32.mrf.mxu0 }
0x1e0a   : > { %v2153_v52 = vadd.f32 %v3591_v23, %v2152_v34  ;;  %v2889_v23 = vld [vmem:[#allocation5 + $0xb8] sm:$0xff]  }
0x1e0b   : > { %v2752_v53 = vpop.f32.mrf.mxu0  ;;  %2765 = vmatpush3.bf16.msra.mxu0 %v2889_v23 }
0x1e0c   : > { %v2198_v54 = vadd.f32 %v2193_v61, %v2153_v52 }
0x1e0d   : > { %v2155_v55 = vpop.f32.mrf.mxu0 }
0x1e0e   : > { %v2494_v20 = vmul.f32 -1.442695, %v2198_v54 }
0x1e0f   : > { %v2753_v30 = vpop.f32.mrf.mxu0 }
0x1e10   : > { %2968 = vpow2.f32 %v2494_v20 }
0x1e1d   : > { %v2969_v39 = vpop.eup %2968 }
0x1e1e   : > { %v2202_v57 = vadd.f32 1.0, %v2969_v39 }
0x1e20   : > { %2970 = vrcp.f32 %v2202_v57 }
0x1e2d   : > { %v2971_v58 = vpop.eup %2970 }
0x1e2e   : > { %v2209_v6 = vmul.f32 %v2971_v58, %v2207_v59  ;;  %v2216_v1 = vsub.f32 1.0, %v2971_v58  ;;  %v2222_v2 = vmul.f32 %v2971_v58, %v3598_v51 }
0x1e30   : > { %2211 = vrot.lane.b32.xlu1 %v2209_v6, %s3108_s12  ;;  %s2408_s12 = sshll.u32 %s3261_s30, 1 }
0x1e31   : > { %s245_s5 = scalar_lea.vmem [#allocation7], %s2408_s12 }
0x1e32   : > { %s2309_s20 = sshll.u32 %s245_s5, 4  ;;  %s3661_s20 = int_to_ptr.vmem [resolvable:$true] %s2309_s20 }
0x1e33   : > { %s3028_s19 = scalar_lea.vmem %s3661_s20, 32  ;;  %p3035_p12 = scmp.lt.s32.totalorder %s3661_s20, %s3033_s11 }
0x1e34   : > { %p3029_p5 = scmp.ne.s32.totalorder %s3661_s20, %s3028_s19  ;;  %p3036_p13 = scmp.lt.s32.totalorder %s3034_s13, %s3028_s19 }
0x1e36   : > { %p3030_p9 = pnand %p3029_p5, %p3721_p7  ;;  %p3037_p0 = por %p3036_p13, %p3035_p12 }
0x1e38   : > { %p3031_p11 = pneg %p3030_p9 }
0x1e3a   : > { %p3038_p10 = pnand %p3037_p0, %p3031_p11 }
0x1ea2   : > { %v2212_v14 = vpop.permute.xlu1 %2211 }
0x1ea3   : > { %v2214_v18 = vadd.f32 %v2212_v14, %v2153_v52 }
0x1ea5   : > { %2972 = vtanh.f32 %v2214_v18 }
0x1eb2   : > { %v2973_v62 = vpop.eup %2972 }
0x1eb3   : > { %2218 = vrot.lane.b32.xlu1 %v2973_v62, %s3110_s25 }
0x1f25   : > { %v2219_v63 = vpop.permute.xlu1 %2218 }
0x1f26   : > { %v2221_v3 = vmul.f32 %v2219_v63, %v2216_v1 }
0x1f28   : > { %v2223_v4 = vadd.f32 %v2222_v2, %v2221_v3 }
0x1f2a   : > { %v2224_v17 = vmax.f32 %v2223_v4, 0.0 }
0x1f2c   : > { %v2229_v19 = vpack.c.bf16 %v2224_v17, %v2224_v17 }
0x1f2e   : > { %2236 = vrot.lane.b32.xlu0 %v2229_v19, %s3110_s25  ;;  %s3659_s25 = scalar_lea.hbm %s3705_s4, %s2500_s21 }
0x1fa0   : > { %v2237_v7 = vpop.permute.xlu0 %2236 }
0x1fa1   : > { %2767 = vmatmul.mubr.msk.bf16.vlgmr.msra.gmra.mxu0 %vm351_vm5, %v2237_v7 }
0x2061   : > { %v2287_v51 = vpop.f32.mrf.mxu0 }
0x2062   : > { %v2288_v8 = vadd.f32 %v2495_v0, %v2287_v51 }
0x2063   : > { %v2768_v9 = vpop.f32.mrf.mxu0 }
0x2064   : > { %2294 = vst.msk [vmem:[%s245_s5] sm:$0x3] %vm2293_vm0, %v2288_v8 }
0x2065   : > { %v2290_v11 = vpop.f32.mrf.mxu0 }
0x2066   : > { %3041 = shalt.err (!%p3038_p10)
}
0x2067   : > { %s3042_s26 = scalar_lea.hbm %s3659_s25, 32  ;;  %s3046_s14 = scalar_lea.hbm %s3705_s4, 256 }
0x2068   : > { %p3043_p2 = scmp.ne.s32.totalorder %s3659_s25, %s3042_s26  ;;  %p3047_p6 = scmp.lt.s32.totalorder %s3659_s25, %s3705_s4 }
0x2069   : > { %p3048_p8 = scmp.lt.s32.totalorder %s3046_s14, %s3042_s26 }
0x206a   : > { %p3044_p1 = pnand %p3043_p2, %p3721_p7 }
0x206b   : > { %p3049_p3 = por %p3048_p8, %p3047_p6 }
0x206c   : > { %p3045_p4 = pneg %p3044_p1 }
0x206e   : > { %p3050_p5 = pnand %p3049_p3, %p3045_p4 }
0x2070   : > { %3053 = shalt.err (!%p3050_p5)
}
0x2071   : > { %2787 = dma.vmem_to_hbm [thread:$0]  (%p3721_p7), %s3661_s20, 32, %s3659_s25, %s2296_s29   ;;  %v2769_v12 = vpop.f32.mrf.mxu0 }
0x2072 PF: > { %p2804_p9 = scmp.ge.s32.totalorder %s3096_s18, 2  ;;  %s2321_s23 = sand.u32 1, %s3084_s15  }
0x2073   : > { %p3722_p11 = scmp.ne.s32.totalorder %s3711_s22, 0  ;;  %s2322_s21 = scalar_lea.sflag [#allocation4], %s2321_s23 }
0x2075   : > { %p2798_p12 = pnand %p2804_p9, %p3722_p11 }
0x2077   : > { %p2799_p13 = pneg %p2798_p12 }
0x2079   : > { %3079 = dma.done.wait (%p2799_p13), %s2322_s21, 32  }
0x207a   : > { %3081 = vsyncadd (%p2799_p13), %s2322_s21, 4294967264  ;;  %p18_p0 = scmp.ge.s32.totalorder %s3193_s27, 10   ;;  %s3723_s15 = smov %s3088_s16 }
0x207b   : > { %s3724_s16 = smov %s3092_s17  ;;  %s3725_s17 = smov %s3213_s9 }
0x207c   : > { %s3726_s18 = smov %s3193_s27  ;;  %20 = sbr.rel (!%p18_p0) target bundleno = 6 (0x6), region = 88 }
0x2081   :  { %2327 = vsyncpa [#allocation3], 1 }
0x2082   :  { %2329 = vsyncpa [#allocation3 + $0x1], 1 }
0x2083   :  { %2330 = vsyncpa [#allocation6], 1 }
0x2084   :  { %2331 = vsyncpa [#allocation4], 1 }
0x2085   :  { %2333 = vsyncpa [#allocation4 + $0x1], 1 }

</bundles_post_ra>
